<compile_context>
chip_gen: v5e
topology: v5e:2x2
jax: 0.10.0
libtpu: 0.0.40
codegen_flags: <defaults>
</compile_context>

<pallas_src>
import numpy as np
import jax
import jax.numpy as jnp
from jax.experimental import pallas as pl
from jax.experimental.pallas import tpu as pltpu

# ---- Arguments() stand-in --------------------------------------------------
N_QUBITS_ARG = 4
M_ARG = 2
N_WIRES = N_QUBITS_ARG * M_ARG        # 8 qubits
DIM = 2 ** N_WIRES                    # 256-dim state vector
BATCH = 8


# ---- circuit construction glue (numpy, fixed params -> fixed matrices) -----
def _embed_1q(u2, wire, n):
    """Full 2^n x 2^n matrix for a 1-qubit gate on `wire` (wire 0 = MSB)."""
    left = np.eye(2 ** wire, dtype=np.complex64)
    right = np.eye(2 ** (n - 1 - wire), dtype=np.complex64)
    return np.kron(np.kron(left, u2), right)


def build_circuit_unitary(rx_theta, ry_theta, n):
    U = np.eye(2 ** n, dtype=np.complex64)
    # RX then RY on every wire, in wire order (application order)
    for w in range(n):
        t = float(rx_theta[w])
        rx = np.array([[np.cos(t / 2), -1j * np.sin(t / 2)],
                       [-1j * np.sin(t / 2), np.cos(t / 2)]], dtype=np.complex64)
        U = _embed_1q(rx, w, n) @ U
        p = float(ry_theta[w])
        ry = np.array([[np.cos(p / 2), -np.sin(p / 2)],
                       [np.sin(p / 2), np.cos(p / 2)]], dtype=np.complex64)
        U = _embed_1q(ry, w, n) @ U
    cnot = np.array([[1, 0, 0, 0],
                     [0, 1, 0, 0],
                     [0, 0, 0, 1],
                     [0, 0, 1, 0]], dtype=np.complex64)
    h = (1.0 / np.sqrt(2.0)) * np.array([[1, 1], [1, -1]], dtype=np.complex64)
    # CNOT(2i, 2i+1) then H(2i) for each adjacent pair
    for i in range(n // 2):
        c = 2 * i
        left = np.eye(2 ** c, dtype=np.complex64)
        right = np.eye(2 ** (n - 2 - c), dtype=np.complex64)
        U = np.kron(np.kron(left, cnot), right) @ U
        U = _embed_1q(h, c, n) @ U
    return U


def build_z_signs(n):
    """(D, n) matrix of PauliZ eigenvalues per basis state / wire (wire 0 = MSB)."""
    d = 2 ** n
    idx = np.arange(d)
    signs = np.zeros((d, n), dtype=np.float32)
    for w in range(n):
        bit = (idx >> (n - 1 - w)) & 1
        signs[:, w] = 1.0 - 2.0 * bit
    return signs


# ---- Pallas kernel: evolution + measurement + classifier, fused ------------
def hybrid_kernel(psi_ref, r_ref, i_ref, c_ref, b_ref, out_ref):
    # psi_ref: (2B, D) rows = [psi_re ; psi_im];  r_ref/i_ref: (D, D) = Re/Im(U^T)
    psi = psi_ref[...]
    zr = jnp.dot(psi, r_ref[...], preferred_element_type=jnp.float32,
                 precision=jax.lax.Precision.HIGHEST)     # psi_stacked @ R
    zi = jnp.dot(psi, i_ref[...], preferred_element_type=jnp.float32,
                 precision=jax.lax.Precision.HIGHEST)     # psi_stacked @ I
    b = psi.shape[0] // 2                                 # static batch (8-aligned)
    yr = zr[:b] - zi[b:]                                  # Re(psi') on the VPU
    yi = zi[:b] + zr[b:]                                  # Im(psi')
    probs = yr * yr + yi * yi                             # (B, D) measurement probs
    # MeasureAll(PauliZ) + Linear folded into c = z_signs @ W  (XLU lane reduce)
    logits = jnp.sum(probs * c_ref[...], axis=-1, keepdims=True) + b_ref[0, 0]
    out_ref[...] = jax.nn.sigmoid(logits)                 # Classifier sigmoid


def hybrid_net_forward(psi_stacked, u_re, u_im, c_row, fc_b):
    two_b, d = psi_stacked.shape
    B = two_b // 2
    flops = 2 * (2 * two_b * d * d)                       # two (2B,D)@(D,D) matmuls
    bytes_accessed = 4 * (psi_stacked.size + u_re.size + u_im.size
                          + c_row.size + fc_b.size + B)
    return pl.pallas_call(
        hybrid_kernel,
        out_shape=jax.ShapeDtypeStruct((B, 1), jnp.float32),
        in_specs=[
            pl.BlockSpec(memory_space=pltpu.MemorySpace.VMEM),   # psi_stacked (2B, D)
            pl.BlockSpec(memory_space=pltpu.MemorySpace.VMEM),   # Re(U^T)     (D, D)
            pl.BlockSpec(memory_space=pltpu.MemorySpace.VMEM),   # Im(U^T)     (D, D)
            pl.BlockSpec(memory_space=pltpu.MemorySpace.VMEM),   # c_row       (1, D)
            pl.BlockSpec(memory_space=pltpu.MemorySpace.SMEM),   # bias        (1, 1)
        ],
        out_specs=pl.BlockSpec(memory_space=pltpu.MemorySpace.VMEM),
        cost_estimate=pl.CostEstimate(flops=flops, transcendentals=B,
                                      bytes_accessed=bytes_accessed),
    )(psi_stacked, u_re, u_im, c_row, fc_b)


if __name__ == "__main__":
    key = jax.random.PRNGKey(0)
    k_re, k_im, k_rx, k_ry, k_w, k_b = jax.random.split(key, 6)

    # deterministic circuit / classifier parameters
    rx_theta = np.asarray(jax.random.uniform(k_rx, (N_WIRES,),
                                             minval=0.0, maxval=2 * np.pi))
    ry_theta = np.asarray(jax.random.uniform(k_ry, (N_WIRES,),
                                             minval=0.0, maxval=2 * np.pi))
    fc_w = np.asarray(jax.random.normal(k_w, (N_WIRES, 1), jnp.float32)) * 0.1
    fc_b = np.asarray(jax.random.normal(k_b, (1, 1), jnp.float32)) * 0.1

    # fixed circuit -> fixed unitary; un-duplicated real/imag weight matrices
    U = build_circuit_unitary(rx_theta, ry_theta, N_WIRES)      # (D, D) complex64
    Ut = U.T                                                    # psi' = psi @ U^T
    u_re = np.ascontiguousarray(np.real(Ut)).astype(np.float32)  # (D, D)
    u_im = np.ascontiguousarray(np.imag(Ut)).astype(np.float32)  # (D, D)

    # fold MeasureAll(PauliZ) + Linear weight into one (1, D) vector
    z_signs = build_z_signs(N_WIRES)                             # (D, n_wires)
    c_row = (z_signs @ fc_w).T.astype(np.float32)                # (1, D)

    # deterministic example input: normalized complex state vectors (B, D)
    re = jax.random.normal(k_re, (BATCH, DIM), jnp.float32)
    im = jax.random.normal(k_im, (BATCH, DIM), jnp.float32)
    norm = jnp.sqrt(jnp.sum(re * re + im * im, axis=-1, keepdims=True))
    psi_re = re / norm
    psi_im = im / norm
    # stack along rows: [psi_re ; psi_im]  -> (2B, D)
    psi_stacked = jnp.concatenate([psi_re, psi_im], axis=0)

    out = hybrid_net_forward(psi_stacked,
                             jnp.asarray(u_re),
                             jnp.asarray(u_im),
                             jnp.asarray(c_row),
                             jnp.asarray(fc_b))
    out = jax.block_until_ready(out)

    # pure numpy reference (original un-fused math path)
    psi = np.asarray(psi_re) + 1j * np.asarray(psi_im)
    psi_out = psi @ (u_re + 1j * u_im)
    probs = np.abs(psi_out) ** 2
    expvals = probs @ z_signs
    logits = expvals @ fc_w + fc_b
    ref = 1.0 / (1.0 + np.exp(-logits))
    assert np.allclose(np.asarray(out), ref, rtol=1e-4, atol=1e-4), \
        f"mismatch: {np.max(np.abs(np.asarray(out) - ref))}"

    print("KERNEL_OK")
</pallas_src>

<mosaic_0001>
module attributes {stable_mosaic.version = 11 : i64} {
  func.func @hybrid_kernel(%arg0: memref<16x256xf32, #tpu.memory_space<vmem>>, %arg1: memref<256x256xf32, #tpu.memory_space<vmem>>, %arg2: memref<256x256xf32, #tpu.memory_space<vmem>>, %arg3: memref<1x256xf32, #tpu.memory_space<vmem>>, %arg4: memref<1x1xf32, #tpu.memory_space<smem>>, %arg5: memref<8x1xf32, #tpu.memory_space<vmem>>) attributes {dimension_semantics = [], scalar_prefetch = 0 : i64, scratch_operands = 0 : i64, tpu.core_type = #tpu.core_type<tc>} {
    %c0 = arith.constant 0 : index
    %c0_0 = arith.constant 0 : index
    %0 = vector.load %arg0[%c0, %c0_0] : memref<16x256xf32, #tpu.memory_space<vmem>>, vector<16x256xf32>
    %c0_1 = arith.constant 0 : index
    %c0_2 = arith.constant 0 : index
    %1 = vector.load %arg1[%c0_1, %c0_2] : memref<256x256xf32, #tpu.memory_space<vmem>>, vector<256x256xf32>
    %cst = arith.constant dense<0.000000e+00> : vector<16x256xf32>
    %2 = tpu.matmul %0, %1, %cst {dimension_numbers = #tpu.dot_dimension_numbers<[1], [0], [0], [1], [0, 0, 1, 1], [], []>, precision = #tpu.contract_precision<fp32>} : vector<16x256xf32>, vector<256x256xf32>, vector<16x256xf32> -> vector<16x256xf32>
    %c0_3 = arith.constant 0 : index
    %c0_4 = arith.constant 0 : index
    %3 = vector.load %arg2[%c0_3, %c0_4] : memref<256x256xf32, #tpu.memory_space<vmem>>, vector<256x256xf32>
    %cst_5 = arith.constant dense<0.000000e+00> : vector<16x256xf32>
    %4 = tpu.matmul %0, %3, %cst_5 {dimension_numbers = #tpu.dot_dimension_numbers<[1], [0], [0], [1], [0, 0, 1, 1], [], []>, precision = #tpu.contract_precision<fp32>} : vector<16x256xf32>, vector<256x256xf32>, vector<16x256xf32> -> vector<16x256xf32>
    %5 = vector.extract_strided_slice %2 {offsets = [0, 0], sizes = [8, 256], strides = [1, 1]} : vector<16x256xf32> to vector<8x256xf32>
    %6 = vector.extract_strided_slice %4 {offsets = [8, 0], sizes = [8, 256], strides = [1, 1]} : vector<16x256xf32> to vector<8x256xf32>
    %7 = arith.subf %5, %6 : vector<8x256xf32>
    %8 = vector.extract_strided_slice %4 {offsets = [0, 0], sizes = [8, 256], strides = [1, 1]} : vector<16x256xf32> to vector<8x256xf32>
    %9 = vector.extract_strided_slice %2 {offsets = [8, 0], sizes = [8, 256], strides = [1, 1]} : vector<16x256xf32> to vector<8x256xf32>
    %10 = arith.addf %8, %9 : vector<8x256xf32>
    %11 = arith.mulf %7, %7 : vector<8x256xf32>
    %12 = arith.mulf %10, %10 : vector<8x256xf32>
    %13 = arith.addf %11, %12 : vector<8x256xf32>
    %c0_6 = arith.constant 0 : index
    %c0_7 = arith.constant 0 : index
    %14 = vector.load %arg3[%c0_6, %c0_7] : memref<1x256xf32, #tpu.memory_space<vmem>>, vector<1x256xf32>
    %15 = vector.broadcast %14 : vector<1x256xf32> to vector<8x256xf32>
    %16 = arith.mulf %13, %15 : vector<8x256xf32>
    %cst_8 = arith.constant dense<0.000000e+00> : vector<8xf32>
    %17 = vector.multi_reduction <add>, %16, %cst_8 [1] : vector<8x256xf32> to vector<8xf32>
    %18 = vector.shape_cast %17 : vector<8xf32> to vector<8x1xf32>
    %c0_9 = arith.constant 0 : index
    %c0_10 = arith.constant 0 : index
    %19 = memref.load %arg4[%c0_9, %c0_10] : memref<1x1xf32, #tpu.memory_space<smem>>
    %20 = vector.broadcast %19 : f32 to vector<8x1xf32>
    %21 = arith.addf %18, %20 : vector<8x1xf32>
    %22 = arith.negf %21 : vector<8x1xf32>
    %23 = math.exp %22 : vector<8x1xf32>
    %cst_11 = arith.constant 1.000000e+00 : f32
    %24 = vector.broadcast %cst_11 : f32 to vector<8x1xf32>
    %25 = arith.addf %24, %23 : vector<8x1xf32>
    %26 = arith.divf %24, %25 : vector<8x1xf32>
    %c0_12 = arith.constant 0 : index
    %c0_13 = arith.constant 0 : index
    %27 = vector.load %arg5[%c0_12, %c0_13] : memref<8x1xf32, #tpu.memory_space<vmem>>, vector<8x1xf32>
    tpu.vector_store %arg5[%c0_12, %c0_13], %26 {strides = array<i32>} : memref<8x1xf32, #tpu.memory_space<vmem>>, vector<8x1xf32>,
    return
  }
}

</mosaic_0001>

<bundles_post_ra>
// kernel: tpu_custom_call.1
= control target key start
LH: loop header
LB: loop body
LE: loop exit
PB: predicated region body
PF: predicated region fallthrough
CT: control target
= control target key end

     0   :  { %11 = vsyncpa [#allocation4], 0  ;;  %s5460_s0 = inlined_call_operand.hbm [shape: f32[16,256], index: 0, kind: input, shape index: {}]   ;;  %s5461_s1 = inlined_call_operand.hbm [shape: f32[256,256], index: 1, kind: input, shape index: {}]   ;;  %s5462_s2 = inlined_call_operand.hbm [shape: f32[256,256], index: 2, kind: input, shape index: {}]   ;;  %s5463_s3 = inlined_call_operand.vmem [shape: f32[1,256], index: 3, kind: input, shape index: {}]   ;;  %s5464_s4 = inlined_call_operand.<no memory space> [shape: f32[1,1], index: 4, kind: input, shape index: {}]   ;;  %s5465_s5 = inlined_call_operand.vmem [shape: f32[8,1], index: 5, kind: output, shape index: {}]  }
   0x1   :  { %12 = vsyncpa [#allocation6], 0  ;;  %s30_s20 = sshll.u32 %s5461_s1, 4  ;;  %s3313_s21 = smov [#allocation5]   ;;  %s31_s20 = int_to_ptr.hbm [resolvable:$true] %s30_s20 }
   0x2   :  { %s32_s22 = sshll.u32 %s3313_s21, 4  ;;  %s17_s25 = sshll.u32 %s5460_s0, 4  ;;  %s33_s22 = int_to_ptr.vmem [resolvable:$true] %s32_s22  ;;  %s18_s25 = int_to_ptr.hbm [resolvable:$true] %s17_s25 }
   0x3   :  { %s3314_s26 = smov 256   ;;  %s3315_s27 = smov 16  }
   0x4   :  { %38 = dma.hbm_to_vmem [thread:$0]  %s31_s20, 8192, %s33_s22, [#allocation6], %s3314_s26, %s3314_s26, %s3315_s27  }
   0x5   :  { %s3316_s28 = smov [#allocation3]   ;;  %s43_s7 = sshll.u32 %s5462_s2, 4  ;;  %s44_s7 = int_to_ptr.hbm [resolvable:$true] %s43_s7 }
   0x6   :  { %s19_s29 = sshll.u32 %s3316_s28, 4  ;;  %s3317_s1 = smov [#allocation7]   ;;  %s20_s29 = int_to_ptr.vmem [resolvable:$true] %s19_s29 }
   0x7   :  { %25 = dma.hbm_to_vmem [thread:$0]  %s18_s25, 512, %s20_s29, [#allocation4], %s3314_s26, %s3314_s26, %s3315_s27  }
   0x8   :  { %s45_s8 = sshll.u32 %s3317_s1, 4  ;;  %s46_s8 = int_to_ptr.vmem [resolvable:$true] %s45_s8 }
   0x9   :  { %51 = dma.hbm_to_vmem [thread:$0]  %s44_s7, 8192, %s46_s8, [#allocation6], %s3314_s26, %s3314_s26, %s3315_s27  }
   0xa   :  { %3309 = dma.done.wait [#allocation4], 512  }
   0xb   :  { %3310 = vsyncadd [#allocation4], 4294966784 }
   0xc   :  { %3311 = dma.done.wait [#allocation6], 16384  }
   0xd   :  { %3312 = vsyncadd [#allocation6], 4294950912  ;;  %v102_v0 = vld [vmem:[#allocation5 + $0xf0] sm:$0xff]  ;;  %v100_v1 = vld [vmem:[#allocation5 + $0xe0] sm:$0xff]  ;;  %vm3219_vm3 = vcmask 7168  }
   0xe   :  { %v98_v2 = vld [vmem:[#allocation5 + $0xd0] sm:$0xff]  ;;  %v3357_v3 = vand.u32 4294901760, %v102_v0  ;;  %v3359_v4 = vand.u32 4294901760, %v100_v1  ;;  %v96_v6 = vld [vmem:[#allocation5 + $0xc0] sm:$0xff] }
   0xf   :  { %v3361_v5 = vand.u32 4294901760, %v98_v2  ;;  %v94_v7 = vld [vmem:[#allocation5 + $0xb0] sm:$0xff]  ;;  %v92_v8 = vld [vmem:[#allocation5 + $0xa0] sm:$0xff]  ;;  %v3363_v9 = vand.u32 4294901760, %v96_v6 }
  0x10   :  { %v3365_v10 = vand.u32 4294901760, %v94_v7  ;;  %v3367_v11 = vand.u32 4294901760, %v92_v8  ;;  %v90_v12 = vld [vmem:[#allocation5 + $0x90] sm:$0xff]  ;;  %v88_v13 = vld [vmem:[#allocation5 + $0x80] sm:$0xff]  ;;  %137 = vmatpush.msra.mxu0 %v3357_v3  ;;  %v3371_v14 = vsub.f32 %v102_v0, %v3357_v3  ;;  %v3374_v15 = vsub.f32 %v100_v1, %v3359_v4  ;;  %350 = vmatpush.msra.mxu3 %v3357_v3 }
  0x11   :  { %v3378_v16 = vsub.f32 %v98_v2, %v3361_v5  ;;  %v3380_v17 = vand.u32 4294901760, %v90_v12  ;;  %v86_v18 = vld [vmem:[#allocation5 + $0x70] sm:$0xff]  ;;  %v3383_v19 = vsub.f32 %v96_v6, %v3363_v9  ;;  %v3388_v21 = vand.u32 4294901760, %v88_v13  ;;  %v84_v26 = vld [vmem:[#allocation5 + $0x60] sm:$0xff] }
  0x12   :  { %v3386_v20 = vsub.f32 %v94_v7, %v3365_v10  ;;  %139 = vmatpush.msra.mxu0 %v3359_v4  ;;  %292 = vmatpush.msra.mxu2 %v3371_v14  ;;  %v187_v22 = vand.u32 4294901760, %v3371_v14  ;;  %v5482_v23 = vand.u32 4294901760, %v3374_v15  ;;  %v3396_v25 = vsub.f32 %v92_v8, %v3367_v11  ;;  %v82_v36 = vld [vmem:[#allocation5 + $0x50] sm:$0xff]  ;;  %v80_v42 = vld [vmem:[#allocation5 + $0x40] sm:$0xff] }
  0x13   :  { %v5479_v24 = vand.u32 4294901760, %v3378_v16  ;;  %352 = vmatpush.msra.mxu3 %v3359_v4  ;;  %v5478_v27 = vand.u32 4294901760, %v3383_v19  ;;  %v3400_v28 = vand.u32 4294901760, %v86_v18  ;;  %v3403_v29 = vsub.f32 %v90_v12, %v3380_v17  ;;  %v78_v48 = vld [vmem:[#allocation5 + $0x30] sm:$0xff]  ;;  %v76_v54 = vld [vmem:[#allocation5 + $0x20] sm:$0xff] }
  0x14   :  { %141 = vmatpush.msra.mxu0 %v3361_v5  ;;  %295 = vmatpush.msra.mxu2 %v3374_v15  ;;  %v188_v30 = vsub.f32 %v3371_v14, %v187_v22  ;;  %v194_v31 = vsub.f32 %v3374_v15, %v5482_v23  ;;  %v5475_v33 = vand.u32 4294901760, %v3386_v20  ;;  %v3418_v34 = vand.u32 4294901760, %v84_v26  ;;  %v134_v59 = vld [vmem:[#allocation5 + $0x1f0] sm:$0xff]  ;;  %v132_v2 = vld [vmem:[#allocation5 + $0x1e0] sm:$0xff] }
  0x15   :  { %v200_v32 = vsub.f32 %v3378_v16, %v5479_v24  ;;  %354 = vmatpush.msra.mxu3 %v3361_v5  ;;  %v3421_v35 = vsub.f32 %v88_v13, %v3388_v21  ;;  %v206_v39 = vsub.f32 %v3383_v19, %v5478_v27  ;;  %v5474_v40 = vand.u32 4294901760, %v3396_v25  ;;  %v74_v61 = vld [vmem:[#allocation5 + $0x10] sm:$0xff]  ;;  %v72_v7 = vld [vmem:[#allocation5] sm:$0xff] }
  0x16   :  { %143 = vmatpush.msra.mxu0 %v3363_v9  ;;  %v189_v37 = vand.u32 4294901760, %v188_v30  ;;  %298 = vmatpush.msra.mxu2 %v3378_v16  ;;  %v195_v38 = vand.u32 4294901760, %v194_v31  ;;  %v5472_v41 = vand.u32 4294901760, %v3403_v29  ;;  %v212_v44 = vsub.f32 %v3386_v20, %v5475_v33  ;;  %v130_v30 = vld [vmem:[#allocation5 + $0x1d0] sm:$0xff] }
  0x17   :  { %356 = vmatpush.msra.mxu3 %v3363_v9  ;;  %v201_v43 = vand.u32 4294901760, %v200_v32  ;;  %v3435_v45 = vand.u32 4294901760, %v82_v36  ;;  %v3438_v46 = vsub.f32 %v86_v18, %v3400_v28  ;;  %v5471_v47 = vand.u32 4294901760, %v3421_v35 }
  0x18   :  { %145 = vmatpush.msra.mxu0 %v3365_v10  ;;  %190 = vmatpush.msra.mxu1 %v189_v37  ;;  %v207_v49 = vand.u32 4294901760, %v206_v39  ;;  %v218_v50 = vsub.f32 %v3396_v25, %v5474_v40  ;;  %v3447_v51 = vand.u32 4294901760, %v80_v42  ;;  %v3450_v52 = vsub.f32 %v84_v26, %v3418_v34 }
  0x19   :  { %301 = vmatpush.msra.mxu2 %v3383_v19  ;;  %358 = vmatpush.msra.mxu3 %v3365_v10  ;;  %v224_v53 = vsub.f32 %v3403_v29, %v5472_v41  ;;  %v213_v55 = vand.u32 4294901760, %v212_v44  ;;  %v3458_v56 = vand.u32 4294901760, %v78_v48  ;;  %v5469_v57 = vand.u32 4294901760, %v3438_v46 }
  0x1a   :  { %147 = vmatpush.msra.mxu0 %v3367_v11  ;;  %196 = vmatpush.msra.mxu1 %v195_v38  ;;  %v3462_v58 = vsub.f32 %v82_v36, %v3435_v45  ;;  %v230_v60 = vsub.f32 %v3421_v35, %v5471_v47  ;;  %v219_v62 = vand.u32 4294901760, %v218_v50  ;;  %v3470_v63 = vand.u32 4294901760, %v76_v54 }
  0x1b   :  { %304 = vmatpush.msra.mxu2 %v3386_v20  ;;  %360 = vmatpush.msra.mxu3 %v3367_v11  ;;  %v5468_v0 = vand.u32 4294901760, %v3450_v52  ;;  %v3474_v1 = vsub.f32 %v80_v42, %v3447_v51  ;;  %v225_v6 = vand.u32 4294901760, %v224_v53  ;;  %v3478_v8 = vand.u32 4294901760, %v134_v59  ;;  %v128_v42 = vld [vmem:[#allocation5 + $0x1c0] sm:$0xff] }
  0x1c   :  { %149 = vmatpush.msra.mxu0 %v3380_v17  ;;  %202 = vmatpush.msra.mxu1 %v201_v43  ;;  %v236_v12 = vsub.f32 %v3438_v46, %v5469_v57  ;;  %v3484_v13 = vand.u32 4294901760, %v74_v61  ;;  %v5467_v18 = vand.u32 4294901760, %v3462_v58  ;;  %v3488_v26 = vsub.f32 %v78_v48, %v3458_v56  ;;  %v122_v57 = vld [vmem:[#allocation5 + $0x190] sm:$0xff] }
  0x1d   :  { %307 = vmatpush.msra.mxu2 %v3396_v25  ;;  %362 = vmatpush.msra.mxu3 %v3380_v17  ;;  %v231_v31 = vand.u32 4294901760, %v230_v60  ;;  %v3492_v32 = vand.u32 4294901760, %v132_v2  ;;  %v242_v36 = vsub.f32 %v3450_v52, %v5468_v0  ;;  %v3498_v37 = vand.u32 4294901760, %v72_v7 }
  0x1e   :  { %151 = vmatpush.msra.mxu0 %v3388_v21  ;;  %208 = vmatpush.msra.mxu1 %v207_v49  ;;  %v5466_v38 = vand.u32 4294901760, %v3474_v1  ;;  %v3502_v39 = vsub.f32 %v76_v54, %v3470_v63  ;;  %v3507_v43 = vsub.f32 %v134_v59, %v3478_v8  ;;  %v3509_v44 = vand.u32 4294901760, %v130_v30  ;;  %v126_v59 = vld [vmem:[#allocation5 + $0x1b0] sm:$0xff] }
  0x1f   :  { %310 = vmatpush.msra.mxu2 %v3403_v29  ;;  %364 = vmatpush.msra.mxu3 %v3388_v21  ;;  %5573 = vst [vmem:[#allocation10_spill] sm:$0xff] %v3498_v37  ;;  %v237_v48 = vand.u32 4294901760, %v236_v12  ;;  %v248_v49 = vsub.f32 %v3462_v58, %v5467_v18  ;;  %v5470_v50 = vand.u32 4294901760, %v3488_v26  ;;  %v3517_v53 = vsub.f32 %v74_v61, %v3484_v13 }
  0x20   :  { %153 = vmatpush.msra.mxu0 %v3400_v28  ;;  %214 = vmatpush.msra.mxu1 %v213_v55  ;;  %v3522_v54 = vsub.f32 %v132_v2, %v3492_v32  ;;  %v3524_v55 = vand.u32 4294901760, %v128_v42  ;;  %v243_v60 = vand.u32 4294901760, %v242_v36  ;;  %v5473_v61 = vand.u32 4294901760, %v3502_v39 }
  0x21   :  { %313 = vmatpush.msra.mxu2 %v3421_v35  ;;  %366 = vmatpush.msra.mxu3 %v3400_v28  ;;  %v5476_v2 = vand.u32 4294901760, %v3507_v43  ;;  %v3538_v12 = vsub.f32 %v130_v30, %v3509_v44  ;;  %v249_v36 = vand.u32 4294901760, %v248_v49  ;;  %v3545_v18 = vand.u32 4294901760, %v126_v59 }
  0x22   :  { %155 = vmatpush.msra.mxu0 %v3418_v34  ;;  %220 = vmatpush.msra.mxu1 %v219_v62  ;;  %v254_v62 = vsub.f32 %v3474_v1, %v5466_v38  ;;  %v260_v38 = vsub.f32 %v3488_v26, %v5470_v50  ;;  %v5480_v30 = vand.u32 4294901760, %v3522_v54  ;;  %v3551_v0 = vsub.f32 %v128_v42, %v3524_v55 }
  0x23   :  { %316 = vmatpush.msra.mxu2 %v3438_v46  ;;  %368 = vmatpush.msra.mxu3 %v3418_v34  ;;  %v266_v49 = vsub.f32 %v3502_v39, %v5473_v61  ;;  %v560_v42 = vsub.f32 %v3507_v43, %v5476_v2  ;;  %v5483_v41 = vand.u32 4294901760, %v3538_v12  ;;  %v3571_v40 = vsub.f32 %v126_v59, %v3545_v18 }
  0x24   :  { %157 = vmatpush.msra.mxu0 %v3435_v45  ;;  %226 = vmatpush.msra.mxu1 %v225_v6  ;;  %v3532_v6 = vsub.f32 %v72_v7, %v3498_v37  ;;  %v5477_v7 = vand.u32 4294901760, %v3517_v53  ;;  %v3573_v33 = vand.u32 4294901760, %v122_v57  ;;  %v566_v2 = vsub.f32 %v3522_v54, %v5480_v30 }
  0x25   :  { %319 = vmatpush.msra.mxu2 %v3450_v52  ;;  %370 = vmatpush.msra.mxu3 %v3435_v45  ;;  %v561_v30 = vand.u32 4294901760, %v560_v42  ;;  %v5574_v14 = vand.u32 4294901760, %v3374_v15  ;;  %v5575_v42 = vand.u32 4294901760, %v3551_v0  ;;  %v5576_v15 = vand.u32 4294901760, %v3378_v16 }
  0x26   :  { %159 = vmatpush.msra.mxu0 %v3447_v51  ;;  %232 = vmatpush.msra.mxu1 %v231_v31  ;;  %v124_v31 = vld [vmem:[#allocation5 + $0x1a0] sm:$0xff]  ;;  %v5481_v50 = vand.u32 4294901760, %v3532_v6  ;;  %v272_v61 = vsub.f32 %v3517_v53, %v5477_v7  ;;  %v267_v7 = vand.u32 4294901760, %v266_v49  ;;  %v5578_v16 = vand.u32 4294901760, %v3383_v19 }
  0x27   :  { %322 = vmatpush.msra.mxu2 %v3462_v58  ;;  %372 = vmatpush.msra.mxu3 %v3447_v51  ;;  %v3558_v47 = vand.u32 4294901760, %v124_v31  ;;  %v116_v49 = vld [vmem:[#allocation5 + $0x160] sm:$0xff]  ;;  %v5581_v19 = vand.u32 4294901760, %v3386_v20 }
  0x28   :  { %161 = vmatpush.msra.mxu0 %v3458_v56  ;;  %238 = vmatpush.msra.mxu1 %v237_v48  ;;  %v255_v48 = vand.u32 4294901760, %v254_v62  ;;  %v261_v62 = vand.u32 4294901760, %v260_v38  ;;  %v118_v38 = vld [vmem:[#allocation5 + $0x170] sm:$0xff]  ;;  %v278_v59 = vsub.f32 %v3532_v6, %v5481_v50  ;;  %v3599_v50 = vsub.f32 %v122_v57, %v3573_v33 }
  0x29   :  { %325 = vmatpush.msra.mxu2 %v3474_v1  ;;  %374 = vmatpush.msra.mxu3 %v3458_v56  ;;  %v3586_v27 = vsub.f32 %v124_v31, %v3558_v47  ;;  %v3601_v23 = vand.u32 4294901760, %v118_v38 }
  0x2a   :  { %163 = vmatpush.msra.mxu0 %v3470_v63  ;;  %244 = vmatpush.msra.mxu1 %v243_v60  ;;  %v120_v60 = vld [vmem:[#allocation5 + $0x180] sm:$0xff] }
  0x2b   :  { %328 = vmatpush.msra.mxu2 %v3488_v26  ;;  %376 = vmatpush.msra.mxu3 %v3470_v63  ;;  %v3588_v24 = vand.u32 4294901760, %v120_v60 }
  0x2c   :  { %165 = vmatpush.msra.mxu0 %v3484_v13  ;;  %250 = vmatpush.msra.mxu1 %v249_v36  ;;  %v273_v36 = vand.u32 4294901760, %v272_v61  ;;  %v114_v61 = vld [vmem:[#allocation5 + $0x150] sm:$0xff] }
  0x2d   :  { %331 = vmatpush.msra.mxu2 %v3502_v39  ;;  %378 = vmatpush.msra.mxu3 %v3484_v13  ;;  %v3612_v31 = vsub.f32 %v120_v60, %v3588_v24  ;;  %v3624_v60 = vsub.f32 %v118_v38, %v3601_v23  ;;  %v3626_v57 = vand.u32 4294901760, %v114_v61 }
  0x2e   :  { %167 = vmatpush.msra.mxu0 %v3498_v37  ;;  %256 = vmatpush.msra.mxu1 %v255_v48  ;;  %v572_v48 = vsub.f32 %v3538_v12, %v5483_v41  ;;  %v279_v41 = vand.u32 4294901760, %v278_v59 }
  0x2f   :  { %334 = vmatpush.msra.mxu2 %v3517_v53  ;;  %380 = vmatpush.msra.mxu3 %v3498_v37  ;;  %v3614_v37 = vand.u32 4294901760, %v116_v49 }
  0x30   :  { %397 = vmatpush.msrb.mxu0 %v187_v22  ;;  %262 = vmatpush.msra.mxu1 %v261_v62  ;;  %v567_v22 = vand.u32 4294901760, %v566_v2  ;;  %v578_v62 = vsub.f32 %v3551_v0, %v5575_v42  ;;  %v573_v2 = vand.u32 4294901760, %v572_v48  ;;  %v112_v42 = vld [vmem:[#allocation5 + $0x140] sm:$0xff] }
  0x31   :  { %337 = vmatpush.msra.mxu2 %v3532_v6  ;;  %562 = vmatpush.msrb.mxu3 %v561_v30 }
  0x32   :  { %401 = vmatpush.msrb.mxu0 %v5574_v14  ;;  %268 = vmatpush.msra.mxu1 %v267_v7  ;;  %v68_v14 = vld [vmem:[#allocation3] sm:$0xff]  ;;  %v5577_v7 = vand.u32 4294901760, %v3571_v40  ;;  %v579_v30 = vand.u32 4294901760, %v578_v62 }
  0x33   :  { %509 = vmatpush.msrb.mxu2 %v3478_v8  ;;  %568 = vmatpush.msrb.mxu3 %v567_v22  ;;  %v3638_v38 = vand.u32 4294901760, %v68_v14  ;;  %v5582_v22 = vand.u32 4294901760, %v3599_v50 }
  0x34   :  { %405 = vmatpush.msrb.mxu0 %v5576_v15  ;;  %274 = vmatpush.msra.mxu1 %v273_v36  ;;  %v584_v59 = vsub.f32 %v3571_v40, %v5577_v7  ;;  %v5579_v36 = vand.u32 4294901760, %v3586_v27  ;;  %v3636_v7 = vsub.f32 %v116_v49, %v3614_v37  ;;  %v3649_v49 = vsub.f32 %v114_v61, %v3626_v57 }
  0x35   :  { %511 = vmatpush.msrb.mxu2 %v3492_v32  ;;  %5580 = vst [vmem:[#allocation11_spill] sm:$0xff] %v3638_v38  ;;  %574 = vmatpush.msrb.mxu3 %v573_v2  ;;  %v596_v62 = vsub.f32 %v3599_v50, %v5582_v22  ;;  %v5583_v15 = vand.u32 4294901760, %v3396_v25  ;;  %v5584_v2 = vand.u32 4294901760, %v3612_v31  ;;  %v3662_v61 = vsub.f32 %v68_v14, %v3638_v38  ;;  %v108_v22 = vld [vmem:[#allocation5 + $0x120] sm:$0xff] }
  0x36   :  { %409 = vmatpush.msrb.mxu0 %v5578_v16  ;;  %280 = vmatpush.msra.mxu1 %v279_v41  ;;  %v590_v48 = vsub.f32 %v3586_v27, %v5579_v36  ;;  %v585_v41 = vand.u32 4294901760, %v584_v59  ;;  %v5486_v16 = vand.u32 4294901760, %v3624_v60  ;;  %v110_v36 = vld [vmem:[#allocation5 + $0x130] sm:$0xff]  ;;  %v5585_v25 = vand.u32 4294901760, %v3403_v29 }
  0x37   :  { %513 = vmatpush.msrb.mxu2 %v3509_v44  ;;  %580 = vmatpush.msrb.mxu3 %v579_v30  ;;  %v602_v59 = vsub.f32 %v3612_v31, %v5584_v2  ;;  %v597_v30 = vand.u32 4294901760, %v596_v62  ;;  %v5586_v14 = vand.u32 4294901760, %v3421_v35  ;;  %v106_v2 = vld [vmem:[#allocation5 + $0x110] sm:$0xff]  ;;  %v3687_v35 = vand.u32 4294901760, %v3662_v61 }
  0x38   :  { %413 = vmatpush.msrb.mxu0 %v5581_v19  ;;  %468 = vmatpush.msrb.mxu1 %v3357_v3  ;;  %v3654_v3 = vand.u32 4294901760, %v112_v42  ;;  %v591_v20 = vand.u32 4294901760, %v590_v48  ;;  %v5485_v19 = vand.u32 4294901760, %v3636_v7  ;;  %v608_v48 = vsub.f32 %v3624_v60, %v5486_v16  ;;  %v104_v16 = vld [vmem:[#allocation5 + $0x100] sm:$0xff] }
  0x39   :  { %515 = vmatpush.msrb.mxu2 %v3524_v55  ;;  %586 = vmatpush.msrb.mxu3 %v585_v41  ;;  %v603_v41 = vand.u32 4294901760, %v602_v59 }
  0x3a   :  { %417 = vmatpush.msrb.mxu0 %v5583_v15  ;;  %470 = vmatpush.msrb.mxu1 %v3359_v4  ;;  %v3667_v4 = vand.u32 4294901760, %v110_v36  ;;  %v619_v15 = vand.u32 4294901760, %v3649_v49  ;;  %v3678_v29 = vsub.f32 %v112_v42, %v3654_v3  ;;  %v614_v62 = vsub.f32 %v3636_v7, %v5485_v19 }
  0x3b   :  { %517 = vmatpush.msrb.mxu2 %v3545_v18  ;;  %592 = vmatpush.msrb.mxu3 %v591_v20  ;;  %v609_v20 = vand.u32 4294901760, %v608_v48  ;;  %v171_v48 = vsub.f32 %v3662_v61, %v3687_v35 }
  0x3c   :  { %421 = vmatpush.msrb.mxu0 %v5585_v25  ;;  %472 = vmatpush.msrb.mxu1 %v3361_v5  ;;  %v3680_v5 = vand.u32 4294901760, %v108_v22  ;;  %v70_v25 = vld [vmem:[#allocation3 + $0x10] sm:$0xff]  ;;  %v3693_v42 = vsub.f32 %v110_v36, %v3667_v4  ;;  %v620_v59 = vsub.f32 %v3649_v49, %v619_v15 }
  0x3d   :  { %519 = vmatpush.msrb.mxu2 %v3558_v47  ;;  %598 = vmatpush.msrb.mxu3 %v597_v30  ;;  %v3701_v19 = vand.u32 4294901760, %v70_v25  ;;  %v615_v30 = vand.u32 4294901760, %v614_v62  ;;  %v5592_v62 = vand.u32 4294901760, %v3474_v1 }
  0x3e   :  { %425 = vmatpush.msrb.mxu0 %v5586_v14  ;;  %474 = vmatpush.msrb.mxu1 %v3363_v9  ;;  %v5587_v9 = vand.u32 4294901760, %v3438_v46  ;;  %v3699_v14 = vand.u32 4294901760, %v106_v2  ;;  %v5589_v46 = vand.u32 4294901760, %v3450_v52  ;;  %v3708_v36 = vsub.f32 %v108_v22, %v3680_v5 }
  0x3f   :  { %521 = vmatpush.msrb.mxu2 %v3573_v33  ;;  %5588 = vst [vmem:[#allocation12_spill] sm:$0xff] %v3701_v19  ;;  %604 = vmatpush.msrb.mxu3 %v603_v41  ;;  %v631_v52 = vand.u32 4294901760, %v3693_v42  ;;  %v621_v22 = vand.u32 4294901760, %v620_v59 }
  0x40   :  { %429 = vmatpush.msrb.mxu0 %v5587_v9  ;;  %476 = vmatpush.msrb.mxu1 %v3365_v10  ;;  %v625_v10 = vand.u32 4294901760, %v3678_v29  ;;  %v5590_v9 = vand.u32 4294901760, %v3462_v58  ;;  %v3724_v41 = vsub.f32 %v106_v2, %v3699_v14  ;;  %v637_v58 = vand.u32 4294901760, %v3708_v36 }
  0x41   :  { %523 = vmatpush.msrb.mxu2 %v3588_v24  ;;  %610 = vmatpush.msrb.mxu3 %v609_v20  ;;  %v5593_v2 = vand.u32 4294901760, %v3488_v26  ;;  %v5596_v26 = vand.u32 4294901760, %v3502_v39 }
  0x42   :  { %433 = vmatpush.msrb.mxu0 %v5589_v46  ;;  %478 = vmatpush.msrb.mxu1 %v3367_v11  ;;  %v3717_v11 = vand.u32 4294901760, %v104_v16  ;;  %v3721_v46 = vsub.f32 %v70_v25, %v3701_v19  ;;  %v3734_v25 = vand.u32 4294901760, %v171_v48  ;;  %v643_v20 = vand.u32 4294901760, %v3724_v41 }
  0x43   :  { %525 = vmatpush.msrb.mxu2 %v3601_v23  ;;  %616 = vmatpush.msrb.mxu3 %v615_v30  ;;  %v5597_v48 = vand.u32 4294901760, %v3517_v53 }
  0x44   :  { %437 = vmatpush.msrb.mxu0 %v5590_v9  ;;  %480 = vmatpush.msrb.mxu1 %v3380_v17  ;;  %5591 = vst [vmem:[#allocation13_spill] sm:$0xff] %v3721_v46  ;;  %v626_v17 = vsub.f32 %v3678_v29, %v625_v10  ;;  %v69_v9 = vld [vmem:[#allocation3 + $0x8] sm:$0xff]  ;;  %v3743_v1 = vsub.f32 %v104_v16, %v3717_v11  ;;  %v3748_v59 = vand.u32 4294901760, %v3721_v46 }
  0x45   :  { %527 = vmatpush.msrb.mxu2 %v3614_v37  ;;  %622 = vmatpush.msrb.mxu3 %v621_v22  ;;  %v3750_v30 = vand.u32 4294901760, %v69_v9  ;;  %v638_v16 = vsub.f32 %v3708_v36, %v637_v58 }
  0x46   :  { %441 = vmatpush.msrb.mxu0 %v5592_v62  ;;  %482 = vmatpush.msrb.mxu1 %v3388_v21  ;;  %v632_v21 = vsub.f32 %v3693_v42, %v631_v52  ;;  %5594 = vst [vmem:[#allocation14_spill] sm:$0xff] %v3748_v59  ;;  %v649_v39 = vand.u32 4294901760, %v3743_v1  ;;  %v179_v62 = vsub.f32 %v3721_v46, %v3748_v59 }
  0x47   :  { %529 = vmatpush.msrb.mxu2 %v3626_v57  ;;  %5595 = vst [vmem:[#allocation15_spill] sm:$0xff] %v3750_v30  ;;  %173 = vmatmul.f32.vlgmr.msra.gmra.mxu0 %v3734_v25  ;;  %v639_v53 = vand.u32 4294901760, %v638_v16  ;;  %v5605_v16 = vld [vmem:[#allocation10_spill] sm:$0xff] }
  0x48   :  { %445 = vmatpush.msrb.mxu0 %v5593_v2  ;;  %484 = vmatpush.msrb.mxu1 %v3400_v28  ;;  %v627_v28 = vand.u32 4294901760, %v626_v17  ;;  %v633_v22 = vand.u32 4294901760, %v632_v21  ;;  %v3772_v17 = vsub.f32 %v69_v9, %v3750_v30  ;;  %v5599_v2 = vand.u32 4294901760, %v3532_v6 }
  0x49   :  { %340 = vmatmul.f32.vlgmr.msra.gmra.mxu2 %v3662_v61  ;;  %384 = vmatmul.f32.vlgmr.msra.gmra.mxu3 %v3687_v35  ;;  %v3784_v21 = vand.u32 4294901760, %v179_v62  ;;  %v5602_v6 = vand.u32 4294901760, %v3507_v43  ;;  %v87_v62 = vld [vmem:[#allocation5 + $0x78] sm:$0xff] }
  0x4a   :  { %449 = vmatpush.msrb.mxu0 %v5596_v26  ;;  %486 = vmatpush.msrb.mxu1 %v3418_v34  ;;  %v644_v34 = vsub.f32 %v3724_v41, %v643_v20  ;;  %5598 = vst [vmem:[#allocation16_spill] sm:$0xff] %v3772_v17  ;;  %v3787_v26 = vand.u32 4294901760, %v3772_v17 }
  0x4b   :  { %531 = vmatpush.msrb.mxu2 %v3654_v3  ;;  %628 = vmatpush.msrb.mxu3 %v627_v28  ;;  %5600 = vst [vmem:[#allocation17_spill] sm:$0xff] %v3784_v21 }
  0x4c   :  { %453 = vmatpush.msrb.mxu0 %v5597_v48  ;;  %488 = vmatpush.msrb.mxu1 %v3435_v45  ;;  %v650_v45 = vsub.f32 %v3743_v1, %v649_v39  ;;  %v645_v9 = vand.u32 4294901760, %v644_v34  ;;  %5601 = vst [vmem:[#allocation18_spill] sm:$0xff] %v3787_v26  ;;  %v71_v48 = vld [vmem:[#allocation3 + $0x18] sm:$0xff]  ;;  %v89_v34 = vld [vmem:[#allocation5 + $0x88] sm:$0xff] }
  0x4d   :  { %533 = vmatpush.msrb.mxu2 %v3667_v4  ;;  %282 = vmatmul.f32.vlgmr.msra.gmra.mxu1 %v3638_v38 }
  0x4e   :  { %457 = vmatpush.msrb.mxu0 %v5599_v2  ;;  %490 = vmatpush.msrb.mxu1 %v3447_v51  ;;  %v651_v51 = vand.u32 4294901760, %v650_v45  ;;  %v85_v45 = vld [vmem:[#allocation5 + $0x68] sm:$0xff] }
  0x4f   :  { %535 = vmatpush.msrb.mxu2 %v3680_v5  ;;  %634 = vmatpush.msrb.mxu3 %v633_v22 }
  0x50   :  { %664 = vmatpush.msra.mxu0 %v3507_v43  ;;  %492 = vmatpush.msrb.mxu1 %v3458_v56  ;;  %v543_v56 = vsub.f32 %v3772_v17, %v3787_v26  ;;  %v3817_v43 = vand.u32 4294901760, %v71_v48 }
  0x51   :  { %537 = vmatpush.msrb.mxu2 %v3699_v14  ;;  %640 = vmatpush.msrb.mxu3 %v639_v53 }
  0x52   :  { %345 = vmatmul.f32.gmra.mxu2 %v3721_v46  ;;  %667 = vmatpush.msra.mxu0 %v3522_v54  ;;  %v3806_v28 = vand.u32 4294901760, %v543_v56  ;;  %5607 = vst [vmem:[#allocation10_spill] sm:$0xff] %v3817_v43 }
  0x53   :  { %494 = vmatpush.msrb.mxu1 %v3470_v63  ;;  %539 = vmatpush.msrb.mxu2 %v3717_v11  ;;  %v5603_v63 = vand.u32 4294901760, %v3522_v54  ;;  %v5608_v54 = vand.u32 4294901760, %v3551_v0 }
  0x54   :  { %646 = vmatpush.msrb.mxu3 %v645_v9  ;;  %181 = vmatmul.f32.gmra.mxu0 %v3784_v21  ;;  %5604 = vst [vmem:[#allocation19_spill] sm:$0xff] %v3806_v28 }
  0x55   :  { %390 = vmatmul.f32.gmra.mxu3 %v3748_v59  ;;  %670 = vmatpush.msra.mxu0 %v3538_v12  ;;  %v119_v59 = vld [vmem:[#allocation5 + $0x178] sm:$0xff] }
  0x56   :  { %769 = vmatpush.msra.mxu2 %v5602_v6  ;;  %496 = vmatpush.msrb.mxu1 %v3484_v13  ;;  %v5606_v13 = vand.u32 4294901760, %v3538_v12  ;;  %v3830_v12 = vsub.f32 %v71_v48, %v3817_v43 }
  0x57   :  { %652 = vmatpush.msrb.mxu3 %v651_v51  ;;  %286 = vmatmul.f32.gmra.mxu1 %v3701_v19 }
  0x58   :  { %673 = vmatpush.msra.mxu0 %v3551_v0  ;;  %773 = vmatpush.msra.mxu2 %v5603_v63  ;;  %5610 = vst [vmem:[#allocation20_spill] sm:$0xff] %v3830_v12  ;;  %v5611_v0 = vand.u32 4294901760, %v3586_v27 }
  0x59   :  { %840 = vmatpush.msra.mxu3 %v3478_v8  ;;  %498 = vmatpush.msrb.mxu1 %v5605_v16  ;;  %v3965_v16 = vand.u32 4294901760, %v85_v45 }
  0x5a   :  { %676 = vmatpush.msra.mxu0 %v3571_v40  ;;  %777 = vmatpush.msra.mxu2 %v5606_v13  ;;  %v83_v13 = vld [vmem:[#allocation5 + $0x58] sm:$0xff] }
  0x5b   :  { %722 = vmatpush.msra.mxu1 %v3478_v8  ;;  %842 = vmatpush.msra.mxu3 %v3492_v32  ;;  %v5609_v8 = vand.u32 4294901760, %v3571_v40  ;;  %v3842_v40 = vand.u32 4294901760, %v3830_v12 }
  0x5c   :  { %545 = vmatmul.f32.vlgmr.msrb.gmra.mxu2 %v3806_v28  ;;  %679 = vmatpush.msra.mxu0 %v3586_v27  ;;  %v5614_v27 = vand.u32 4294901760, %v3612_v31 }
  0x5d   :  { %724 = vmatpush.msra.mxu1 %v3492_v32  ;;  %781 = vmatpush.msra.mxu2 %v5608_v54  ;;  %5612 = vst [vmem:[#allocation21_spill] sm:$0xff] %v3842_v40  ;;  %v5613_v32 = vand.u32 4294901760, %v3599_v50 }
  0x5e   :  { %844 = vmatpush.msra.mxu3 %v3509_v44  ;;  %459 = vmatmul.f32.vlgmr.msrb.gmra.mxu0 %v3638_v38 }
  0x5f   :  { %654 = vmatmul.f32.vlgmr.msrb.gmra.mxu3 %v3750_v30  ;;  %682 = vmatpush.msra.mxu0 %v3599_v50  ;;  %v5616_v50 = vand.u32 4294901760, %v3636_v7 }
  0x60   :  { %726 = vmatpush.msra.mxu1 %v3509_v44  ;;  %785 = vmatpush.msra.mxu2 %v5609_v8  ;;  %v5615_v44 = vand.u32 4294901760, %v3624_v60 }
  0x61   :  { %846 = vmatpush.msra.mxu3 %v3524_v55  ;;  %500 = vmatmul.f32.vlgmr.msrb.gmra.mxu1 %v3638_v38 }
  0x62   :  { %685 = vmatpush.msra.mxu0 %v3612_v31  ;;  %728 = vmatpush.msra.mxu1 %v3524_v55  ;;  %v101_v55 = vld [vmem:[#allocation5 + $0xe8] sm:$0xff] }
  0x63   :  { %789 = vmatpush.msra.mxu2 %v5611_v0  ;;  %848 = vmatpush.msra.mxu3 %v3545_v18 }
  0x64   :  { %688 = vmatpush.msra.mxu0 %v3624_v60  ;;  %730 = vmatpush.msra.mxu1 %v3545_v18  ;;  %v551_v18 = vsub.f32 %v3830_v12, %v3842_v40 }
  0x65   :  { %793 = vmatpush.msra.mxu2 %v5613_v32  ;;  %850 = vmatpush.msra.mxu3 %v3558_v47  ;;  %v81_v32 = vld [vmem:[#allocation5 + $0x48] sm:$0xff] }
  0x66   :  { %691 = vmatpush.msra.mxu0 %v3636_v7  ;;  %732 = vmatpush.msra.mxu1 %v3558_v47  ;;  %v103_v47 = vld [vmem:[#allocation5 + $0xf8] sm:$0xff]  ;;  %v97_v7 = vld [vmem:[#allocation5 + $0xc8] sm:$0xff] }
  0x67   :  { %797 = vmatpush.msra.mxu2 %v5614_v27  ;;  %852 = vmatpush.msra.mxu3 %v3573_v33  ;;  %v3871_v31 = vand.u32 4294901760, %v103_v47  ;;  %v3982_v27 = vand.u32 4294901760, %v83_v13 }
  0x68   :  { %694 = vmatpush.msra.mxu0 %v3649_v49  ;;  %734 = vmatpush.msra.mxu1 %v3573_v33  ;;  %v3866_v33 = vand.u32 4294901760, %v551_v18  ;;  %v95_v49 = vld [vmem:[#allocation5 + $0xb8] sm:$0xff] }
  0x69   :  { %801 = vmatpush.msra.mxu2 %v5615_v44  ;;  %854 = vmatpush.msra.mxu3 %v3588_v24 }
  0x6a   :  { %697 = vmatpush.msra.mxu0 %v3678_v29  ;;  %736 = vmatpush.msra.mxu1 %v3588_v24  ;;  %5617 = vst [vmem:[#allocation22_spill] sm:$0xff] %v3866_v33  ;;  %v99_v24 = vld [vmem:[#allocation5 + $0xd8] sm:$0xff]  ;;  %v3904_v29 = vand.u32 4294901760, %v95_v49 }
  0x6b   :  { %805 = vmatpush.msra.mxu2 %v5616_v50  ;;  %856 = vmatpush.msra.mxu3 %v3601_v23  ;;  %v3884_v60 = vand.u32 4294901760, %v99_v24  ;;  %v3991_v50 = vsub.f32 %v85_v45, %v3965_v16 }
  0x6c   :  { %463 = vmatmul.f32.gmra.mxu0 %v3701_v19  ;;  %738 = vmatpush.msra.mxu1 %v3601_v23  ;;  %v3878_v23 = vand.u32 4294901760, %v101_v55 }
  0x6d   :  { %700 = vmatpush.msra.mxu0 %v3693_v42  ;;  %809 = vmatpush.msra.mxu2 %v619_v15 }
  0x6e   :  { %858 = vmatpush.msra.mxu3 %v3614_v37  ;;  %740 = vmatpush.msra.mxu1 %v3614_v37  ;;  %v3887_v37 = vsub.f32 %v103_v47, %v3871_v31  ;;  %v3895_v15 = vsub.f32 %v101_v55, %v3878_v23  ;;  %v79_v55 = vld [vmem:[#allocation5 + $0x38] sm:$0xff] }
  0x6f   :  { %703 = vmatpush.msra.mxu0 %v3708_v36  ;;  %813 = vmatpush.msra.mxu2 %v625_v10  ;;  %v3908_v10 = vsub.f32 %v99_v24, %v3884_v60  ;;  %v91_v36 = vld [vmem:[#allocation5 + $0x98] sm:$0xff] }
  0x70   :  { %860 = vmatpush.msra.mxu3 %v3626_v57  ;;  %553 = vmatmul.f32.gmra.mxu2 %v3866_v33  ;;  %v5496_v42 = vand.u32 4294901760, %v3887_v37 }
  0x71   :  { %706 = vmatpush.msra.mxu0 %v3724_v41  ;;  %742 = vmatpush.msra.mxu1 %v3626_v57  ;;  %v3900_v57 = vand.u32 4294901760, %v97_v7  ;;  %v5494_v41 = vand.u32 4294901760, %v3908_v10 }
  0x72   :  { %817 = vmatpush.msra.mxu2 %v631_v52  ;;  %862 = vmatpush.msra.mxu3 %v3654_v3  ;;  %v93_v52 = vld [vmem:[#allocation5 + $0xa8] sm:$0xff] }
  0x73   :  { %658 = vmatmul.f32.gmra.mxu3 %v3817_v43  ;;  %709 = vmatpush.msra.mxu0 %v3743_v1  ;;  %v3921_v22 = vsub.f32 %v97_v7, %v3900_v57  ;;  %v944_v51 = vsub.f32 %v3908_v10, %v5494_v41 }
  0x74   :  { %744 = vmatpush.msra.mxu1 %v3654_v3  ;;  %821 = vmatpush.msra.mxu2 %v637_v58  ;;  %v5495_v3 = vand.u32 4294901760, %v3895_v15  ;;  %v3918_v58 = vand.u32 4294901760, %v93_v52 }
  0x75   :  { %864 = vmatpush.msra.mxu3 %v3667_v4  ;;  %504 = vmatmul.f32.gmra.mxu1 %v3701_v19  ;;  %v5492_v53 = vand.u32 4294901760, %v3921_v22  ;;  %v121_v19 = vld [vmem:[#allocation5 + $0x188] sm:$0xff] }
  0x76   :  { %712 = vmatmul.f32.vlgmr.msra.gmra.mxu0 %v3772_v17  ;;  %746 = vmatpush.msra.mxu1 %v3667_v4  ;;  %v932_v4 = vsub.f32 %v3887_v37, %v5496_v42  ;;  %v938_v1 = vsub.f32 %v3895_v15, %v5495_v3  ;;  %v3948_v2 = vsub.f32 %v93_v52, %v3918_v58  ;;  %v125_v17 = vld [vmem:[#allocation5 + $0x1a8] sm:$0xff]  ;;  %v4142_v46 = vand.u32 4294901760, %v121_v19 }
  0x77   :  { %881 = vmatpush.msrb.mxu0 %v3871_v31  ;;  %825 = vmatpush.msra.mxu2 %v643_v20  ;;  %v3931_v20 = vsub.f32 %v95_v49, %v3904_v29  ;;  %v950_v54 = vsub.f32 %v3921_v22, %v5492_v53  ;;  %v3998_v49 = vand.u32 4294901760, %v81_v32  ;;  %v4114_v33 = vand.u32 4294901760, %v125_v17 }
  0x78   :  { %866 = vmatpush.msra.mxu3 %v3680_v5  ;;  %748 = vmatpush.msra.mxu1 %v3680_v5  ;;  %v3935_v5 = vand.u32 4294901760, %v91_v36  ;;  %v933_v9 = vand.u32 4294901760, %v932_v4  ;;  %v939_v63 = vand.u32 4294901760, %v938_v1  ;;  %v5489_v8 = vand.u32 4294901760, %v3948_v2 }
  0x79   :  { %883 = vmatpush.msrb.mxu0 %v3878_v23  ;;  %829 = vmatpush.msra.mxu2 %v649_v39  ;;  %v3942_v39 = vand.u32 4294901760, %v89_v34  ;;  %v5491_v56 = vand.u32 4294901760, %v3931_v20  ;;  %v951_v24 = vand.u32 4294901760, %v950_v54  ;;  %v4006_v4 = vand.u32 4294901760, %v79_v55 }
  0x7a   :  { %868 = vmatpush.msra.mxu3 %v3699_v14  ;;  %831 = vmatmul.f32.vlgmr.msra.gmra.mxu2 %v3750_v30  ;;  %v3961_v6 = vsub.f32 %v91_v36, %v3935_v5  ;;  %v962_v7 = vsub.f32 %v3948_v2, %v5489_v8  ;;  %v77_v36 = vld [vmem:[#allocation5 + $0x28] sm:$0xff]  ;;  %v4022_v54 = vsub.f32 %v81_v32, %v3998_v49 }
  0x7b   :  { %885 = vmatpush.msrb.mxu0 %v3884_v60  ;;  %1036 = vmatpush.msrb.mxu2 %v3887_v37  ;;  %v3968_v48 = vsub.f32 %v89_v34, %v3942_v39  ;;  %v956_v0 = vsub.f32 %v3931_v20, %v5491_v56  ;;  %v4032_v32 = vsub.f32 %v79_v55, %v4006_v4 }
  0x7c   :  { %750 = vmatpush.msra.mxu1 %v3699_v14  ;;  %870 = vmatpush.msra.mxu3 %v3717_v11  ;;  %v3958_v14 = vand.u32 4294901760, %v87_v62  ;;  %v5488_v18 = vand.u32 4294901760, %v3961_v6  ;;  %v5500_v55 = vand.u32 4294901760, %v4022_v54 }
  0x7d   :  { %872 = vmatmul.f32.vlgmr.msra.gmra.mxu3 %v3750_v30  ;;  %887 = vmatpush.msrb.mxu0 %v3900_v57  ;;  %v5487_v47 = vand.u32 4294901760, %v3968_v48  ;;  %v957_v52 = vand.u32 4294901760, %v956_v0  ;;  %v135_v0 = vld [vmem:[#allocation5 + $0x1f8] sm:$0xff] }
  0x7e   :  { %1039 = vmatpush.msrb.mxu2 %v3895_v15  ;;  %1094 = vmatpush.msrb.mxu3 %v3871_v31  ;;  %v3986_v44 = vsub.f32 %v87_v62, %v3958_v14  ;;  %v968_v34 = vsub.f32 %v3961_v6, %v5488_v18  ;;  %v4010_v62 = vsub.f32 %v83_v13, %v3982_v27  ;;  %v75_v13 = vld [vmem:[#allocation5 + $0x18] sm:$0xff]  ;;  %v4048_v53 = vand.u32 4294901760, %v135_v0 }
  0x7f   :  { %752 = vmatpush.msra.mxu1 %v3717_v11  ;;  %889 = vmatpush.msrb.mxu0 %v3904_v29  ;;  %v945_v11 = vand.u32 4294901760, %v944_v51  ;;  %v974_v45 = vsub.f32 %v3968_v48, %v5487_v47  ;;  %v963_v51 = vand.u32 4294901760, %v962_v7 }
  0x80   :  { %756 = vmatmul.f32.vlgmr.msra.gmra.mxu1 %v3787_v26  ;;  %1042 = vmatpush.msrb.mxu2 %v3908_v10  ;;  %v5490_v1 = vand.u32 4294901760, %v3986_v44  ;;  %v969_v47 = vand.u32 4294901760, %v968_v34  ;;  %v5497_v7 = vand.u32 4294901760, %v4010_v62  ;;  %v133_v34 = vld [vmem:[#allocation5 + $0x1e8] sm:$0xff] }
  0x81   :  { %934 = vmatpush.msrb.mxu1 %v933_v9  ;;  %1096 = vmatpush.msrb.mxu3 %v3878_v23  ;;  %v5493_v9 = vand.u32 4294901760, %v3991_v50  ;;  %v975_v18 = vand.u32 4294901760, %v974_v45  ;;  %v4057_v41 = vand.u32 4294901760, %v133_v34 }
  0x82   :  { %891 = vmatpush.msrb.mxu0 %v3918_v58  ;;  %1045 = vmatpush.msrb.mxu2 %v3921_v22 }
  0x83   :  { %940 = vmatpush.msrb.mxu1 %v939_v63  ;;  %1098 = vmatpush.msrb.mxu3 %v3884_v60  ;;  %v4019_v63 = vand.u32 4294901760, %v77_v36  ;;  %v986_v8 = vsub.f32 %v3991_v50, %v5493_v9  ;;  %v4073_v9 = vsub.f32 %v135_v0, %v4048_v53  ;;  %v127_v0 = vld [vmem:[#allocation5 + $0x1b8] sm:$0xff] }
  0x84   :  { %717 = vmatmul.f32.gmra.mxu0 %v3830_v12  ;;  %835 = vmatmul.f32.gmra.mxu2 %v3817_v43 }
  0x85   :  { %893 = vmatpush.msrb.mxu0 %v3935_v5  ;;  %946 = vmatpush.msrb.mxu1 %v945_v11  ;;  %5618 = vst [vmem:[#allocation23_spill] sm:$0xff] %v4019_v63  ;;  %v73_v11 = vld [vmem:[#allocation5 + $0x8] sm:$0xff]  ;;  %v4046_v56 = vsub.f32 %v77_v36, %v4019_v63  ;;  %v131_v36 = vld [vmem:[#allocation5 + $0x1d8] sm:$0xff]  ;;  %v987_v3 = vand.u32 4294901760, %v986_v8 }
  0x86   :  { %1048 = vmatpush.msrb.mxu2 %v3931_v20  ;;  %1100 = vmatpush.msrb.mxu3 %v3900_v57  ;;  %v4077_v8 = vand.u32 4294901760, %v131_v36 }
  0x87   :  { %876 = vmatmul.f32.gmra.mxu3 %v3817_v43  ;;  %895 = vmatpush.msrb.mxu0 %v3942_v39  ;;  %v4102_v43 = vand.u32 4294901760, %v127_v0 }
  0x88   :  { %952 = vmatpush.msrb.mxu1 %v951_v24  ;;  %1051 = vmatpush.msrb.mxu2 %v3948_v2  ;;  %v980_v24 = vsub.f32 %v3986_v44, %v5490_v1  ;;  %v4042_v1 = vand.u32 4294901760, %v73_v11 }
  0x89   :  { %1102 = vmatpush.msrb.mxu3 %v3904_v29  ;;  %762 = vmatmul.f32.gmra.mxu1 %v3842_v40  ;;  %v129_v40 = vld [vmem:[#allocation5 + $0x1c8] sm:$0xff] }
  0x8a   :  { %897 = vmatpush.msrb.mxu0 %v3958_v14  ;;  %958 = vmatpush.msrb.mxu1 %v957_v52  ;;  %v4039_v52 = vand.u32 4294901760, %v75_v13  ;;  %v981_v45 = vand.u32 4294901760, %v980_v24  ;;  %v4089_v12 = vand.u32 4294901760, %v129_v40  ;;  %v4100_v24 = vsub.f32 %v131_v36, %v4077_v8 }
  0x8b   :  { %1054 = vmatpush.msrb.mxu2 %v3961_v6  ;;  %1104 = vmatpush.msrb.mxu3 %v3918_v58 }
  0x8c   :  { %899 = vmatpush.msrb.mxu0 %v3965_v16  ;;  %964 = vmatpush.msrb.mxu1 %v963_v51  ;;  %v992_v51 = vsub.f32 %v4010_v62, %v5497_v7  ;;  %v4062_v42 = vsub.f32 %v75_v13, %v4039_v52  ;;  %v4070_v7 = vsub.f32 %v73_v11, %v4042_v1  ;;  %v5619_v13 = vand.u32 4294901760, %v4032_v32 }
  0x8d   :  { %1057 = vmatpush.msrb.mxu2 %v3968_v48  ;;  %1106 = vmatpush.msrb.mxu3 %v3935_v5  ;;  %v4084_v11 = vsub.f32 %v133_v34, %v4057_v41  ;;  %v4112_v36 = vsub.f32 %v129_v40, %v4089_v12  ;;  %v4127_v40 = vsub.f32 %v127_v0, %v4102_v43 }
  0x8e   :  { %901 = vmatpush.msrb.mxu0 %v3982_v27  ;;  %970 = vmatpush.msrb.mxu1 %v969_v47  ;;  %v998_v47 = vsub.f32 %v4022_v54, %v5500_v55  ;;  %v1004_v55 = vsub.f32 %v4032_v32, %v5619_v13  ;;  %v5622_v26 = vand.u32 4294901760, %v4062_v42  ;;  %v5624_v30 = vand.u32 4294901760, %v4070_v7 }
  0x8f   :  { %1060 = vmatpush.msrb.mxu2 %v3986_v44  ;;  %1108 = vmatpush.msrb.mxu3 %v3942_v39  ;;  %5620 = vst [vmem:[#allocation24_spill] sm:$0xff] %v4084_v11  ;;  %v4140_v0 = vsub.f32 %v125_v17, %v4114_v33  ;;  %v115_v17 = vld [vmem:[#allocation5 + $0x158] sm:$0xff] }
  0x90   :  { %903 = vmatpush.msrb.mxu0 %v3998_v49  ;;  %976 = vmatpush.msrb.mxu1 %v975_v18  ;;  %v993_v18 = vand.u32 4294901760, %v992_v51  ;;  %v5621_v51 = vand.u32 4294901760, %v4046_v56  ;;  %v1016_v34 = vsub.f32 %v4062_v42, %v5622_v26  ;;  %v1022_v28 = vsub.f32 %v4070_v7, %v5624_v30 }
  0x91   :  { %1063 = vmatpush.msrb.mxu2 %v3991_v50  ;;  %1110 = vmatpush.msrb.mxu3 %v3958_v14 }
  0x92   :  { %905 = vmatpush.msrb.mxu0 %v4006_v4  ;;  %982 = vmatpush.msrb.mxu1 %v981_v45  ;;  %v999_v45 = vand.u32 4294901760, %v998_v47  ;;  %v1010_v13 = vsub.f32 %v4046_v56, %v5621_v51  ;;  %v123_v51 = vld [vmem:[#allocation5 + $0x198] sm:$0xff]  ;;  %v1017_v21 = vand.u32 4294901760, %v1016_v34  ;;  %v5628_v34 = vand.u32 4294901760, %v4100_v24 }
  0x93   :  { %1066 = vmatpush.msrb.mxu2 %v4010_v62  ;;  %1112 = vmatpush.msrb.mxu3 %v3965_v16 }
  0x94   :  { %907 = vmatpush.msrb.mxu0 %v4019_v63  ;;  %988 = vmatpush.msrb.mxu1 %v987_v3  ;;  %v1005_v3 = vand.u32 4294901760, %v1004_v55  ;;  %v1011_v55 = vand.u32 4294901760, %v1010_v13  ;;  %v5625_v13 = vand.u32 4294901760, %v3887_v37  ;;  %v5627_v37 = vand.u32 4294901760, %v3895_v15 }
  0x95   :  { %1069 = vmatpush.msrb.mxu2 %v4022_v54  ;;  %1114 = vmatpush.msrb.mxu3 %v3982_v27  ;;  %v1316_v26 = vsub.f32 %v4100_v24, %v5628_v34  ;;  %v5629_v15 = vand.u32 4294901760, %v3908_v10  ;;  %v5631_v10 = vand.u32 4294901760, %v3921_v22  ;;  %v4183_v22 = vand.u32 4294901760, %v115_v17 }
  0x96   :  { %909 = vmatpush.msrb.mxu0 %v4039_v52  ;;  %994 = vmatpush.msrb.mxu1 %v993_v18  ;;  %v5623_v18 = vand.u32 4294901760, %v4073_v9 }
  0x97   :  { %1072 = vmatpush.msrb.mxu2 %v4032_v32  ;;  %1116 = vmatpush.msrb.mxu3 %v3998_v49 }
  0x98   :  { %911 = vmatpush.msrb.mxu0 %v4042_v1  ;;  %1000 = vmatpush.msrb.mxu1 %v999_v45  ;;  %v1304_v47 = vsub.f32 %v4073_v9, %v5623_v18  ;;  %v4129_v45 = vand.u32 4294901760, %v123_v51  ;;  %v5626_v18 = vand.u32 4294901760, %v4084_v11 }
  0x99   :  { %1075 = vmatpush.msrb.mxu2 %v4046_v56  ;;  %1118 = vmatpush.msrb.mxu3 %v4006_v4 }
  0x9a   :  { %1141 = vmatpush.msra.mxu0 %v5625_v13  ;;  %1006 = vmatpush.msrb.mxu1 %v1005_v3  ;;  %v1310_v30 = vsub.f32 %v4084_v11, %v5626_v18  ;;  %v1305_v3 = vand.u32 4294901760, %v1304_v47  ;;  %v1023_v13 = vand.u32 4294901760, %v1022_v28  ;;  %v117_v18 = vld [vmem:[#allocation5 + $0x168] sm:$0xff]  ;;  %v4155_v11 = vand.u32 4294901760, %v119_v59 }
  0x9b   :  { %1078 = vmatpush.msrb.mxu2 %v4062_v42  ;;  %1120 = vmatpush.msrb.mxu3 %v4019_v63  ;;  %v4153_v63 = vsub.f32 %v123_v51, %v4129_v45  ;;  %v5630_v47 = vand.u32 4294901760, %v4112_v36  ;;  %v4166_v51 = vsub.f32 %v121_v19, %v4142_v46  ;;  %v4168_v34 = vand.u32 4294901760, %v117_v18 }
  0x9c   :  { %1145 = vmatpush.msra.mxu0 %v5627_v37  ;;  %1012 = vmatpush.msrb.mxu1 %v1011_v55  ;;  %v1311_v28 = vand.u32 4294901760, %v1310_v30  ;;  %v5632_v30 = vand.u32 4294901760, %v4127_v40  ;;  %v4178_v19 = vsub.f32 %v119_v59, %v4155_v11  ;;  %v5633_v37 = vand.u32 4294901760, %v3931_v20 }
  0x9d   :  { %1081 = vmatpush.msrb.mxu2 %v4070_v7  ;;  %1122 = vmatpush.msrb.mxu3 %v4039_v52  ;;  %v1322_v55 = vsub.f32 %v4112_v36, %v5630_v47  ;;  %v5526_v47 = vand.u32 4294901760, %v4153_v63  ;;  %v4191_v59 = vsub.f32 %v117_v18, %v4168_v34  ;;  %v5635_v20 = vand.u32 4294901760, %v3948_v2  ;;  %v109_v2 = vld [vmem:[#allocation5 + $0x128] sm:$0xff] }
  0x9e   :  { %1149 = vmatpush.msra.mxu0 %v5629_v15  ;;  %1018 = vmatpush.msrb.mxu1 %v1017_v21  ;;  %v1317_v21 = vand.u32 4294901760, %v1316_v26  ;;  %v1328_v15 = vsub.f32 %v4127_v40, %v5632_v30  ;;  %v5527_v30 = vand.u32 4294901760, %v4166_v51  ;;  %v5636_v18 = vand.u32 4294901760, %v3961_v6 }
  0x9f   :  { %1253 = vmatpush.msra.mxu2 %v4048_v53  ;;  %1124 = vmatpush.msrb.mxu3 %v4042_v1  ;;  %v1323_v26 = vand.u32 4294901760, %v1322_v55  ;;  %v1340_v55 = vsub.f32 %v4153_v63, %v5526_v47  ;;  %v5637_v6 = vand.u32 4294901760, %v3968_v48 }
  0xa0   :  { %1153 = vmatpush.msra.mxu0 %v5631_v10  ;;  %1024 = vmatpush.msrb.mxu1 %v1023_v13  ;;  %v113_v10 = vld [vmem:[#allocation5 + $0x148] sm:$0xff] }
  0xa1   :  { %1255 = vmatpush.msra.mxu2 %v4057_v41  ;;  %1306 = vmatpush.msra.mxu3 %v1305_v3  ;;  %v5634_v3 = vand.u32 4294901760, %v4140_v0 }
  0xa2   :  { %1157 = vmatpush.msra.mxu0 %v5633_v37  ;;  %1212 = vmatpush.msra.mxu1 %v3871_v31  ;;  %v111_v31 = vld [vmem:[#allocation5 + $0x138] sm:$0xff]  ;;  %v1351_v37 = vand.u32 4294901760, %v4178_v19 }
  0xa3   :  { %1257 = vmatpush.msra.mxu2 %v4077_v8  ;;  %1312 = vmatpush.msra.mxu3 %v1311_v28  ;;  %v1334_v13 = vsub.f32 %v4140_v0, %v5634_v3  ;;  %v1329_v28 = vand.u32 4294901760, %v1328_v15  ;;  %v4201_v3 = vand.u32 4294901760, %v113_v10  ;;  %v1346_v15 = vsub.f32 %v4166_v51, %v5527_v30 }
  0xa4   :  { %1161 = vmatpush.msra.mxu0 %v5635_v20  ;;  %1214 = vmatpush.msra.mxu1 %v3878_v23  ;;  %v4207_v23 = vsub.f32 %v115_v17, %v4183_v22  ;;  %v1357_v20 = vand.u32 4294901760, %v4191_v59  ;;  %v4214_v47 = vand.u32 4294901760, %v111_v31  ;;  %v1352_v17 = vsub.f32 %v4178_v19, %v1351_v37 }
  0xa5   :  { %1259 = vmatpush.msra.mxu2 %v4089_v12  ;;  %1318 = vmatpush.msra.mxu3 %v1317_v21  ;;  %v1335_v21 = vand.u32 4294901760, %v1334_v13  ;;  %v4226_v13 = vand.u32 4294901760, %v109_v2  ;;  %v5638_v30 = vand.u32 4294901760, %v3986_v44  ;;  %v1347_v48 = vand.u32 4294901760, %v1346_v15 }
  0xa6   :  { %1165 = vmatpush.msra.mxu0 %v5636_v18  ;;  %1216 = vmatpush.msra.mxu1 %v3884_v60  ;;  %v1341_v60 = vand.u32 4294901760, %v1340_v55  ;;  %v107_v18 = vld [vmem:[#allocation5 + $0x118] sm:$0xff]  ;;  %v5639_v55 = vand.u32 4294901760, %v3991_v50 }
  0xa7   :  { %1261 = vmatpush.msra.mxu2 %v4102_v43  ;;  %1324 = vmatpush.msra.mxu3 %v1323_v26  ;;  %v4224_v26 = vsub.f32 %v113_v10, %v4201_v3  ;;  %v4237_v10 = vsub.f32 %v111_v31, %v4214_v47  ;;  %v4242_v44 = vand.u32 4294901760, %v107_v18  ;;  %v4247_v15 = vsub.f32 %v109_v2, %v4226_v13 }
  0xa8   :  { %1169 = vmatpush.msra.mxu0 %v5637_v6  ;;  %1218 = vmatpush.msra.mxu1 %v3900_v57  ;;  %v1363_v57 = vand.u32 4294901760, %v4207_v23  ;;  %v5640_v31 = vand.u32 4294901760, %v4010_v62  ;;  %v5641_v2 = vand.u32 4294901760, %v4022_v54 }
  0xa9   :  { %1263 = vmatpush.msra.mxu2 %v4114_v33  ;;  %1330 = vmatpush.msra.mxu3 %v1329_v28  ;;  %v1358_v28 = vsub.f32 %v4191_v59, %v1357_v20  ;;  %v1375_v6 = vand.u32 4294901760, %v4237_v10  ;;  %v4263_v62 = vsub.f32 %v107_v18, %v4242_v44 }
  0xaa   :  { %1173 = vmatpush.msra.mxu0 %v5638_v30  ;;  %1220 = vmatpush.msra.mxu1 %v3904_v29  ;;  %v105_v29 = vld [vmem:[#allocation5 + $0x108] sm:$0xff]  ;;  %v1353_v30 = vand.u32 4294901760, %v1352_v17  ;;  %v1381_v17 = vand.u32 4294901760, %v4247_v15 }
  0xab   :  { %1265 = vmatpush.msra.mxu2 %v4129_v45  ;;  %1336 = vmatpush.msra.mxu3 %v1335_v21  ;;  %v1369_v21 = vand.u32 4294901760, %v4224_v26  ;;  %v1359_v50 = vand.u32 4294901760, %v1358_v28  ;;  %v5643_v28 = vand.u32 4294901760, %v4046_v56 }
  0xac   :  { %1177 = vmatpush.msra.mxu0 %v5639_v55  ;;  %1222 = vmatpush.msra.mxu1 %v3918_v58  ;;  %v1364_v58 = vsub.f32 %v4207_v23, %v1363_v57  ;;  %v1382_v55 = vsub.f32 %v4247_v15, %v1381_v17 }
  0xad   :  { %1267 = vmatpush.msra.mxu2 %v4142_v46  ;;  %1342 = vmatpush.msra.mxu3 %v1341_v60  ;;  %v4257_v60 = vand.u32 4294901760, %v105_v29 }
  0xae   :  { %1181 = vmatpush.msra.mxu0 %v5640_v31  ;;  %1224 = vmatpush.msra.mxu1 %v3935_v5  ;;  %v1370_v5 = vsub.f32 %v4224_v26, %v1369_v21  ;;  %v1365_v54 = vand.u32 4294901760, %v1364_v58  ;;  %v1383_v31 = vand.u32 4294901760, %v1382_v55  ;;  %v5645_v58 = vand.u32 4294901760, %v4070_v7  ;;  %v5647_v7 = vld [vmem:[#allocation24_spill] sm:$0xff] }
  0xaf   :  { %1269 = vmatpush.msra.mxu2 %v4155_v11  ;;  %1348 = vmatpush.msra.mxu3 %v1347_v48  ;;  %v5642_v48 = vand.u32 4294901760, %v4032_v32  ;;  %v4278_v18 = vsub.f32 %v105_v29, %v4257_v60  ;;  %v1387_v32 = vand.u32 4294901760, %v4263_v62  ;;  %v5644_v29 = vand.u32 4294901760, %v4062_v42 }
  0xb0   :  { %1185 = vmatpush.msra.mxu0 %v5641_v2  ;;  %1226 = vmatpush.msra.mxu1 %v3942_v39  ;;  %v1376_v39 = vsub.f32 %v4237_v10, %v1375_v6 }
  0xb1   :  { %1271 = vmatpush.msra.mxu2 %v4168_v34  ;;  %1354 = vmatpush.msra.mxu3 %v1353_v30  ;;  %v1393_v30 = vand.u32 4294901760, %v4278_v18 }
  0xb2   :  { %1189 = vmatpush.msra.mxu0 %v5642_v48  ;;  %1228 = vmatpush.msra.mxu1 %v3958_v14  ;;  %v1371_v14 = vand.u32 4294901760, %v1370_v5  ;;  %v1377_v56 = vand.u32 4294901760, %v1376_v39  ;;  %v5649_v5 = vld [vmem:[#allocation17_spill] sm:$0xff]  ;;  %v5650_v48 = vld [vmem:[#allocation14_spill] sm:$0xff]  ;;  %v5653_v39 = vand.u32 4294901760, %v5647_v7 }
  0xb3   :  { %1273 = vmatpush.msra.mxu2 %v4183_v22  ;;  %1360 = vmatpush.msra.mxu3 %v1359_v50  ;;  %v1394_v42 = vsub.f32 %v4278_v18, %v1393_v30  ;;  %v5646_v50 = vld [vmem:[#allocation13_spill] sm:$0xff] }
  0xb4   :  { %1084 = vmatmul.f32.vlgmr.msrb.gmra.mxu2 %v3662_v61  ;;  %1193 = vmatpush.msra.mxu0 %v5643_v28  ;;  %v5655_v28 = vld [vmem:[#allocation19_spill] sm:$0xff] }
  0xb5   :  { %1230 = vmatpush.msra.mxu1 %v3965_v16  ;;  %1275 = vmatpush.msra.mxu2 %v4201_v3  ;;  %v1388_v16 = vsub.f32 %v4263_v62, %v1387_v32  ;;  %v1395_v2 = vand.u32 4294901760, %v1394_v42 }
  0xb6   :  { %1366 = vmatpush.msra.mxu3 %v1365_v54  ;;  %917 = vmatmul.f32.vlgmr.msrb.gmra.mxu0 %v3734_v25  ;;  %v5652_v54 = vld [vmem:[#allocation12_spill] sm:$0xff] }
  0xb7   :  { %1128 = vmatmul.f32.vlgmr.msrb.gmra.mxu3 %v3687_v35  ;;  %1197 = vmatpush.msra.mxu0 %v5644_v29  ;;  %v5658_v29 = vand.u32 4294901760, %v4127_v40 }
  0xb8   :  { %1232 = vmatpush.msra.mxu1 %v3982_v27  ;;  %1277 = vmatpush.msra.mxu2 %v4214_v47  ;;  %v1389_v27 = vand.u32 4294901760, %v1388_v16 }
  0xb9   :  { %1372 = vmatpush.msra.mxu3 %v1371_v14  ;;  %1026 = vmatmul.f32.vlgmr.msrb.gmra.mxu1 %v3638_v38  ;;  %v5656_v14 = vand.u32 4294901760, %v4112_v36 }
  0xba   :  { %1201 = vmatpush.msra.mxu0 %v5645_v58  ;;  %1234 = vmatpush.msra.mxu1 %v3998_v49  ;;  %v5648_v49 = vld [vmem:[#allocation23_spill] sm:$0xff]  ;;  %v1648_v58 = vld [vmem:[#allocation7 + $0xc0] sm:$0xff] }
  0xbb   :  { %1279 = vmatpush.msra.mxu2 %v4226_v13  ;;  %1378 = vmatpush.msra.mxu3 %v1377_v56  ;;  %v5659_v56 = vand.u32 4294901760, %v4140_v0 }
  0xbc   :  { %1408 = vmatpush.msrb.mxu0 %v4073_v9  ;;  %1236 = vmatpush.msra.mxu1 %v4006_v4  ;;  %v5651_v4 = vand.u32 4294901760, %v4073_v9  ;;  %v5654_v9 = vand.u32 4294901760, %v4100_v24 }
  0xbd   :  { %1281 = vmatpush.msra.mxu2 %v4242_v44  ;;  %1384 = vmatpush.msra.mxu3 %v1383_v31 }
  0xbe   :  { %1089 = vmatmul.f32.gmra.mxu2 %v5646_v50  ;;  %1411 = vmatpush.msrb.mxu0 %v5647_v7  ;;  %v1670_v50 = vld [vmem:[#allocation7 + $0x170] sm:$0xff] }
  0xbf   :  { %1238 = vmatpush.msra.mxu1 %v5648_v49  ;;  %1283 = vmatpush.msra.mxu2 %v4257_v60 }
  0xc0   :  { %1390 = vmatpush.msra.mxu3 %v1389_v27  ;;  %925 = vmatmul.f32.gmra.mxu0 %v5649_v5 }
  0xc1   :  { %1134 = vmatmul.f32.gmra.mxu3 %v5650_v48  ;;  %1414 = vmatpush.msrb.mxu0 %v4100_v24  ;;  %v1676_v48 = vld [vmem:[#allocation7 + $0x1a0] sm:$0xff] }
  0xc2   :  { %1513 = vmatpush.msrb.mxu2 %v5651_v4  ;;  %1240 = vmatpush.msra.mxu1 %v4039_v52  ;;  %v4629_v5 = vand.u32 4294901760, %v1676_v48 }
  0xc3   :  { %1396 = vmatpush.msra.mxu3 %v1395_v2  ;;  %1030 = vmatmul.f32.gmra.mxu1 %v5652_v54  ;;  %v1644_v2 = vld [vmem:[#allocation7 + $0xa0] sm:$0xff] }
  0xc4   :  { %1417 = vmatpush.msrb.mxu0 %v4112_v36  ;;  %1517 = vmatpush.msrb.mxu2 %v5653_v39  ;;  %v174_v52 = vpop.f32.mrf.mxu0  ;;  %v5664_v39 = vld [vmem:[#allocation16_spill] sm:$0xff] }
  0xc5   :  { %1584 = vmatpush.msrb.mxu3 %v4048_v53  ;;  %1242 = vmatpush.msra.mxu1 %v4042_v1  ;;  %v5657_v1 = vld [vmem:[#allocation15_spill] sm:$0xff] }
  0xc6   :  { %1420 = vmatpush.msrb.mxu0 %v4127_v40  ;;  %1521 = vmatpush.msrb.mxu2 %v5654_v9  ;;  %v1642_v9 = vld [vmem:[#allocation7 + $0x90] sm:$0xff] }
  0xc7   :  { %1466 = vmatpush.msrb.mxu1 %v4048_v53  ;;  %1586 = vmatpush.msrb.mxu3 %v4057_v41 }
  0xc8   :  { %1289 = vmatmul.f32.vlgmr.msra.gmra.mxu2 %v5655_v28  ;;  %1423 = vmatpush.msrb.mxu0 %v4140_v0 }
  0xc9   :  { %1468 = vmatpush.msrb.mxu1 %v4057_v41  ;;  %1525 = vmatpush.msrb.mxu2 %v5656_v14  ;;  %v4426_v14 = vand.u32 4294901760, %v1644_v2 }
  0xca   :  { %1588 = vmatpush.msrb.mxu3 %v4077_v8  ;;  %1203 = vmatmul.f32.vlgmr.msra.gmra.mxu0 %v3638_v38  ;;  %v283_v53 = vpop.f32.mrf.mxu1 }
  0xcb   :  { %1398 = vmatmul.f32.vlgmr.msra.gmra.mxu3 %v5657_v1  ;;  %1426 = vmatpush.msrb.mxu0 %v4153_v63  ;;  %v284_v24 = vadd.f32 %v283_v53, %v174_v52  ;;  %v1640_v53 = vld [vmem:[#allocation7 + $0x80] sm:$0xff] }
  0xcc   :  { %v341_v55 = vpop.f32.mrf.mxu2  ;;  %1470 = vmatpush.msrb.mxu1 %v4077_v8  ;;  %1529 = vmatpush.msrb.mxu2 %v5658_v29  ;;  %v385_v36 = vpop.f32.mrf.mxu3  ;;  %v5660_v8 = vand.u32 4294901760, %v4153_v63 }
  0xcd   :  { %1590 = vmatpush.msrb.mxu3 %v4089_v12  ;;  %1244 = vmatmul.f32.vlgmr.msra.gmra.mxu1 %v3638_v38  ;;  %v342_v41 = vadd.f32 %v341_v55, %v284_v24  ;;  %v4452_v55 = vand.u32 4294901760, %v1640_v53  ;;  %v1668_v38 = vld [vmem:[#allocation7 + $0x160] sm:$0xff] }
  0xce   :  { %1429 = vmatpush.msrb.mxu0 %v4166_v51  ;;  %1472 = vmatpush.msrb.mxu1 %v4089_v12  ;;  %v5661_v12 = vand.u32 4294901760, %v4166_v51 }
  0xcf   :  { %1533 = vmatpush.msrb.mxu2 %v5659_v56  ;;  %1592 = vmatpush.msrb.mxu3 %v4102_v43  ;;  %v386_v16 = vadd.f32 %v385_v36, %v342_v41  ;;  %v4456_v41 = vsub.f32 %v1644_v2, %v4426_v14 }
  0xd0   :  { %1432 = vmatpush.msrb.mxu0 %v4178_v19  ;;  %1474 = vmatpush.msrb.mxu1 %v4102_v43 }
  0xd1   :  { %1537 = vmatpush.msrb.mxu2 %v5660_v8  ;;  %1594 = vmatpush.msrb.mxu3 %v4114_v33  ;;  %v182_v40 = vpop.f32.mrf.mxu0 }
  0xd2   :  { %1435 = vmatpush.msrb.mxu0 %v4191_v59  ;;  %1476 = vmatpush.msrb.mxu1 %v4114_v33  ;;  %v1654_v33 = vld [vmem:[#allocation7 + $0xf0] sm:$0xff] }
  0xd3   :  { %1541 = vmatpush.msrb.mxu2 %v5661_v12  ;;  %1596 = vmatpush.msrb.mxu3 %v4129_v45  ;;  %v1650_v59 = vld [vmem:[#allocation7 + $0xd0] sm:$0xff] }
  0xd4   :  { %1438 = vmatpush.msrb.mxu0 %v4207_v23  ;;  %1478 = vmatpush.msrb.mxu1 %v4129_v45  ;;  %v287_v43 = vpop.f32.mrf.mxu1  ;;  %v1652_v45 = vld [vmem:[#allocation7 + $0xe0] sm:$0xff]  ;;  %v4390_v31 = vand.u32 4294901760, %v1650_v59 }
  0xd5   :  { %1545 = vmatpush.msrb.mxu2 %v1351_v37  ;;  %1598 = vmatpush.msrb.mxu3 %v4142_v46  ;;  %v288_v63 = vadd.f32 %v287_v43, %v182_v40  ;;  %v346_v0 = vpop.f32.mrf.mxu2  ;;  %v4375_v37 = vand.u32 4294901760, %v1654_v33  ;;  %v5662_v23 = vld [vmem:[#allocation22_spill] sm:$0xff] }
  0xd6   :  { %1441 = vmatpush.msrb.mxu0 %v4224_v26  ;;  %1480 = vmatpush.msrb.mxu1 %v4142_v46  ;;  %v4412_v49 = vsub.f32 %v1650_v59, %v4390_v31 }
  0xd7   :  { %1549 = vmatpush.msrb.mxu2 %v1357_v20  ;;  %1600 = vmatpush.msrb.mxu3 %v4155_v11  ;;  %v347_v51 = vadd.f32 %v346_v0, %v288_v63  ;;  %v1634_v0 = vld [vmem:[#allocation7 + $0x50] sm:$0xff] }
  0xd8   :  { %1207 = vmatmul.f32.gmra.mxu0 %v5652_v54  ;;  %1482 = vmatpush.msrb.mxu1 %v4155_v11  ;;  %v391_v19 = vpop.f32.mrf.mxu3  ;;  %v4384_v11 = vand.u32 4294901760, %v1652_v45 }
  0xd9   :  { %1444 = vmatpush.msrb.mxu0 %v4237_v10  ;;  %1553 = vmatpush.msrb.mxu2 %v1363_v57  ;;  %v4377_v46 = vadd.f32 %v391_v19, %v347_v51  ;;  %v4406_v10 = vand.u32 4294901760, %v1648_v58  ;;  %v5529_v19 = vand.u32 4294901760, %v4456_v41 }
  0xda   :  { %1602 = vmatpush.msrb.mxu3 %v4168_v34  ;;  %1484 = vmatpush.msrb.mxu1 %v4168_v34  ;;  %v4393_v34 = vsub.f32 %v1654_v33, %v4375_v37  ;;  %v4401_v42 = vsub.f32 %v1652_v45, %v4384_v11  ;;  %v5665_v33 = vld [vmem:[#allocation18_spill] sm:$0xff] }
  0xdb   :  { %1447 = vmatpush.msrb.mxu0 %v4247_v15  ;;  %1557 = vmatpush.msrb.mxu2 %v1369_v21  ;;  %v460_v20 = vpop.f32.mrf.mxu0  ;;  %v5663_v21 = vld [vmem:[#allocation10_spill] sm:$0xff] }
  0xdc   :  { %1604 = vmatpush.msrb.mxu3 %v4183_v22  ;;  %1297 = vmatmul.f32.gmra.mxu2 %v5662_v23  ;;  %v461_v57 = vadd.f32 %v460_v20, %v386_v16  ;;  %v1636_v16 = vld [vmem:[#allocation7 + $0x60] sm:$0xff]  ;;  %v1678_v23 = vld [vmem:[#allocation7 + $0x1b0] sm:$0xff] }
  0xdd   :  { %1450 = vmatpush.msrb.mxu0 %v4263_v62  ;;  %1486 = vmatpush.msrb.mxu1 %v4183_v22  ;;  %v1646_v22 = vld [vmem:[#allocation7 + $0xb0] sm:$0xff]  ;;  %v4479_v45 = vand.u32 4294901760, %v1636_v16 }
  0xde   :  { %1561 = vmatpush.msrb.mxu2 %v1375_v6  ;;  %1606 = vmatpush.msrb.mxu3 %v4201_v3  ;;  %v501_v26 = vpop.f32.mrf.mxu1  ;;  %v5536_v6 = vand.u32 4294901760, %v4393_v34 }
  0xdf   :  { %1402 = vmatmul.f32.gmra.mxu3 %v5663_v21  ;;  %1453 = vmatpush.msrb.mxu0 %v4278_v18  ;;  %v502_v27 = vadd.f32 %v501_v26, %v461_v57  ;;  %v546_v7 = vpop.f32.mrf.mxu2  ;;  %v4491_v57 = vand.u32 4294901760, %v1634_v0 }
  0xe0   :  { %1488 = vmatpush.msrb.mxu1 %v4201_v3  ;;  %1565 = vmatpush.msrb.mxu2 %v1381_v17  ;;  %v4416_v3 = vand.u32 4294901760, %v1646_v22  ;;  %v5535_v17 = vand.u32 4294901760, %v4401_v42  ;;  %v1740_v62 = vsub.f32 %v4393_v34, %v5536_v6 }
  0xe1   :  { %1608 = vmatpush.msrb.mxu3 %v4214_v47  ;;  %1248 = vmatmul.f32.gmra.mxu1 %v5652_v54  ;;  %v547_v4 = vadd.f32 %v546_v7, %v502_v27  ;;  %v5667_v7 = vld [vmem:[#allocation20_spill] sm:$0xff] }
  0xe2   :  { %1456 = vmatmul.f32.vlgmr.msrb.gmra.mxu0 %v5664_v39  ;;  %1490 = vmatpush.msrb.mxu1 %v4214_v47  ;;  %v655_v15 = vpop.f32.mrf.mxu3  ;;  %v4429_v47 = vsub.f32 %v1648_v58, %v4406_v10  ;;  %v4443_v24 = vsub.f32 %v1646_v22, %v4416_v3  ;;  %v1746_v18 = vsub.f32 %v4401_v42, %v5535_v17  ;;  %v1741_v36 = vand.u32 4294901760, %v1740_v62  ;;  %v1630_v22 = vld [vmem:[#allocation7 + $0x30] sm:$0xff]  ;;  %v1628_v62 = vld [vmem:[#allocation7 + $0x20] sm:$0xff] }
  0xe3   :  { %1689 = vmatpush.msra.mxu0 %v4375_v37  ;;  %1569 = vmatpush.msrb.mxu2 %v1387_v32  ;;  %v4422_v52 = vadd.f32 %v655_v15, %v547_v4  ;;  %v5532_v32 = vand.u32 4294901760, %v4412_v49  ;;  %v1770_v4 = vsub.f32 %v4456_v41, %v5529_v19 }
  0xe4   :  { %1610 = vmatpush.msrb.mxu3 %v4226_v13  ;;  %1492 = vmatpush.msrb.mxu1 %v4226_v13  ;;  %v4440_v13 = vand.u32 4294901760, %v1642_v9  ;;  %v5531_v29 = vand.u32 4294901760, %v4429_v47  ;;  %v5530_v40 = vand.u32 4294901760, %v4443_v24  ;;  %v1747_v63 = vand.u32 4294901760, %v1746_v18 }
  0xe5   :  { %1691 = vmatpush.msra.mxu0 %v4384_v11  ;;  %1573 = vmatpush.msrb.mxu2 %v1393_v30  ;;  %v1638_v30 = vld [vmem:[#allocation7 + $0x70] sm:$0xff]  ;;  %v1752_v56 = vsub.f32 %v4412_v49, %v5532_v32 }
  0xe6   :  { %1612 = vmatpush.msrb.mxu3 %v4242_v44  ;;  %1575 = vmatmul.f32.vlgmr.msrb.gmra.mxu2 %v5657_v1  ;;  %v4465_v8 = vand.u32 4294901760, %v1638_v30  ;;  %v4469_v12 = vsub.f32 %v1642_v9, %v4440_v13  ;;  %v1758_v51 = vsub.f32 %v4429_v47, %v5531_v29  ;;  %v1764_v20 = vsub.f32 %v4443_v24, %v5530_v40  ;;  %v1626_v40 = vld [vmem:[#allocation7 + $0x10] sm:$0xff] }
  0xe7   :  { %1693 = vmatpush.msra.mxu0 %v4390_v31  ;;  %1844 = vmatpush.msra.mxu2 %v4393_v34  ;;  %v1753_v59 = vand.u32 4294901760, %v1752_v56  ;;  %v4507_v9 = vsub.f32 %v1636_v16, %v4479_v45  ;;  %v4519_v56 = vsub.f32 %v1634_v0, %v4491_v57  ;;  %v1686_v32 = vld [vmem:[#allocation7 + $0x1f0] sm:$0xff] }
  0xe8   :  { %1494 = vmatpush.msrb.mxu1 %v4242_v44  ;;  %1614 = vmatpush.msrb.mxu3 %v4257_v60  ;;  %v5528_v58 = vand.u32 4294901760, %v4469_v12  ;;  %v4495_v26 = vsub.f32 %v1638_v30, %v4465_v8  ;;  %v1759_v2 = vand.u32 4294901760, %v1758_v51  ;;  %v1765_v18 = vand.u32 4294901760, %v1764_v20 }
  0xe9   :  { %1616 = vmatmul.f32.vlgmr.msrb.gmra.mxu3 %v5657_v1  ;;  %1695 = vmatpush.msra.mxu0 %v4406_v10  ;;  %v464_v44 = vpop.f32.mrf.mxu0  ;;  %v5537_v19 = vand.u32 4294901760, %v4507_v9 }
  0xea   :  { %1847 = vmatpush.msra.mxu2 %v4401_v42  ;;  %1902 = vmatpush.msra.mxu3 %v4375_v37  ;;  %v465_v43 = vadd.f32 %v464_v44, %v4377_v46  ;;  %v4483_v46 = vsub.f32 %v1640_v53, %v4452_v55  ;;  %v4510_v53 = vand.u32 4294901760, %v1630_v22  ;;  %v1776_v30 = vsub.f32 %v4469_v12, %v5528_v58 }
  0xeb   :  { %1496 = vmatpush.msrb.mxu1 %v4257_v60  ;;  %1697 = vmatpush.msra.mxu0 %v4416_v3  ;;  %v1632_v60 = vld [vmem:[#allocation7 + $0x40] sm:$0xff]  ;;  %v4523_v44 = vand.u32 4294901760, %v1628_v62  ;;  %v1771_v58 = vand.u32 4294901760, %v1770_v4  ;;  %v1794_v17 = vsub.f32 %v4507_v9, %v5537_v19 }
  0xec   :  { %1500 = vmatmul.f32.vlgmr.msrb.gmra.mxu1 %v5665_v33  ;;  %1850 = vmatpush.msra.mxu2 %v4412_v49  ;;  %v4498_v27 = vand.u32 4294901760, %v1632_v60  ;;  %v5533_v15 = vand.u32 4294901760, %v4483_v46  ;;  %5668 = vst [vmem:[#allocation23_spill] sm:$0xff] %v4510_v53  ;;  %v1777_v4 = vand.u32 4294901760, %v1776_v30  ;;  %v1684_v30 = vld [vmem:[#allocation7 + $0x1e0] sm:$0xff] }
  0xed   :  { %1742 = vmatpush.msra.mxu1 %v1741_v36  ;;  %1904 = vmatpush.msra.mxu3 %v4384_v11  ;;  %v5534_v36 = vand.u32 4294901760, %v4495_v26  ;;  %v4569_v19 = vand.u32 4294901760, %v1684_v30 }
  0xee   :  { %1699 = vmatpush.msra.mxu0 %v4426_v14  ;;  %1853 = vmatpush.msra.mxu2 %v4429_v47  ;;  %5666 = vst [vmem:[#allocation24_spill] sm:$0xff] %v4498_v27  ;;  %v1782_v0 = vsub.f32 %v4483_v46, %v5533_v15 }
  0xef   :  { %1748 = vmatpush.msra.mxu1 %v1747_v63  ;;  %1906 = vmatpush.msra.mxu3 %v4390_v31  ;;  %v4526_v63 = vsub.f32 %v1632_v60, %v4498_v27  ;;  %v5669_v60 = vld [vmem:[#allocation21_spill] sm:$0xff]  ;;  %v1788_v15 = vsub.f32 %v4495_v26, %v5534_v36 }
  0xf0   :  { %1461 = vmatmul.f32.gmra.mxu0 %v5667_v7  ;;  %1579 = vmatmul.f32.gmra.mxu2 %v5663_v21  ;;  %v1783_v36 = vand.u32 4294901760, %v1782_v0  ;;  %v5670_v0 = vand.u32 4294901760, %v4519_v56 }
  0xf1   :  { %1701 = vmatpush.msra.mxu0 %v4440_v13  ;;  %1754 = vmatpush.msra.mxu1 %v1753_v59 }
  0xf2   :  { %1856 = vmatpush.msra.mxu2 %v4443_v24  ;;  %1908 = vmatpush.msra.mxu3 %v4406_v10  ;;  %v505_v16 = vpop.f32.mrf.mxu1 }
  0xf3   :  { %1620 = vmatmul.f32.gmra.mxu3 %v5663_v21  ;;  %1703 = vmatpush.msra.mxu0 %v4452_v55  ;;  %v506_v51 = vadd.f32 %v505_v16, %v465_v43  ;;  %v713_v59 = vpop.f32.mrf.mxu0  ;;  %v554_v20 = vpop.f32.mrf.mxu2  ;;  %v4537_v43 = vsub.f32 %v1630_v22, %v4510_v53  ;;  %v4546_v22 = vand.u32 4294901760, %v1626_v40 }
  0xf4   :  { %1760 = vmatpush.msra.mxu1 %v1759_v2  ;;  %1859 = vmatpush.msra.mxu2 %v4456_v41  ;;  %v714_v29 = vadd.f32 %v713_v59, %v4422_v52  ;;  %v1624_v2 = vld [vmem:[#allocation7] sm:$0xff]  ;;  %v4560_v52 = vand.u32 4294901760, %v1686_v32 }
  0xf5   :  { %1910 = vmatpush.msra.mxu3 %v4416_v3  ;;  %1506 = vmatmul.f32.gmra.mxu1 %v5669_v60  ;;  %v555_v16 = vadd.f32 %v554_v20, %v506_v51  ;;  %v5538_v51 = vand.u32 4294901760, %v4526_v63  ;;  %v4550_v20 = vsub.f32 %v1628_v62, %v4523_v44  ;;  %v4558_v6 = vand.u32 4294901760, %v1624_v2 }
  0xf6   :  { %1705 = vmatpush.msra.mxu0 %v4465_v8  ;;  %1766 = vmatpush.msra.mxu1 %v1765_v18  ;;  %v659_v59 = vpop.f32.mrf.mxu3  ;;  %v4577_v62 = vsub.f32 %v1626_v40, %v4546_v22  ;;  %v4585_v33 = vsub.f32 %v1686_v32, %v4560_v52  ;;  %v5672_v40 = vand.u32 4294901760, %v4537_v43 }
  0xf7   :  { %1862 = vmatpush.msra.mxu2 %v4469_v12  ;;  %1912 = vmatpush.msra.mxu3 %v4426_v14  ;;  %v4552_v18 = vadd.f32 %v659_v59, %v555_v16  ;;  %v1682_v16 = vld [vmem:[#allocation7 + $0x1d0] sm:$0xff]  ;;  %v1800_v59 = vsub.f32 %v4519_v56, %v5670_v0  ;;  %v1806_v60 = vsub.f32 %v4526_v63, %v5538_v51  ;;  %v1795_v0 = vand.u32 4294901760, %v1794_v17 }
  0xf8   :  { %1707 = vmatpush.msra.mxu0 %v4479_v45  ;;  %1772 = vmatpush.msra.mxu1 %v1771_v58  ;;  %v1789_v58 = vand.u32 4294901760, %v1788_v15  ;;  %v1680_v15 = vld [vmem:[#allocation7 + $0x1c0] sm:$0xff]  ;;  %v4582_v7 = vsub.f32 %v1624_v2, %v4558_v6  ;;  %5671 = vst [vmem:[#allocation25_spill] sm:$0xff] %v4585_v33  ;;  %v4587_v39 = vand.u32 4294901760, %v1682_v16  ;;  %v1812_v51 = vsub.f32 %v4537_v43, %v5672_v40 }
  0xf9   :  { %1865 = vmatpush.msra.mxu2 %v4483_v46  ;;  %1914 = vmatpush.msra.mxu3 %v4440_v13  ;;  %v1801_v17 = vand.u32 4294901760, %v1800_v59  ;;  %v4598_v2 = vand.u32 4294901760, %v1680_v15  ;;  %v1807_v1 = vand.u32 4294901760, %v1806_v60  ;;  %v5674_v40 = vand.u32 4294901760, %v4550_v20 }
  0xfa   :  { %1709 = vmatpush.msra.mxu0 %v4491_v57  ;;  %1778 = vmatpush.msra.mxu1 %v1777_v4  ;;  %v1813_v60 = vand.u32 4294901760, %v1812_v51  ;;  %v5676_v51 = vand.u32 4294901760, %v4577_v62 }
  0xfb   :  { %1868 = vmatpush.msra.mxu2 %v4495_v26  ;;  %1916 = vmatpush.msra.mxu3 %v4452_v55  ;;  %v1818_v28 = vsub.f32 %v4550_v20, %v5674_v40  ;;  %v4614_v40 = vand.u32 4294901760, %v1678_v23 }
  0xfc   :  { %1711 = vmatpush.msra.mxu0 %v4498_v27  ;;  %1784 = vmatpush.msra.mxu1 %v1783_v36  ;;  %v4596_v36 = vsub.f32 %v1684_v30, %v4569_v19  ;;  %v1824_v30 = vsub.f32 %v4577_v62, %v5676_v51 }
  0xfd   :  { %1871 = vmatpush.msra.mxu2 %v4507_v9  ;;  %1918 = vmatpush.msra.mxu3 %v4465_v8  ;;  %v757_v4 = vpop.f32.mrf.mxu1  ;;  %v832_v21 = vpop.f32.mrf.mxu2  ;;  %v4642_v51 = vsub.f32 %v1678_v23, %v4614_v40 }
  0xfe   :  { %1713 = vmatpush.msra.mxu0 %v4510_v53  ;;  %1790 = vmatpush.msra.mxu1 %v1789_v58  ;;  %5673 = vst [vmem:[#allocation26_spill] sm:$0xff] %v4596_v36  ;;  %v758_v32 = vadd.f32 %v757_v4, %v714_v29  ;;  %v4610_v58 = vsub.f32 %v1682_v16, %v4587_v39  ;;  %v1825_v23 = vand.u32 4294901760, %v1824_v30 }
  0xff   :  { %1874 = vmatpush.msra.mxu2 %v4519_v56  ;;  %1920 = vmatpush.msra.mxu3 %v4479_v45  ;;  %v4619_v29 = vsub.f32 %v1680_v15, %v4598_v2  ;;  %v1819_v15 = vand.u32 4294901760, %v1818_v28  ;;  %v5679_v28 = vand.u32 4294901760, %v4393_v34 }
 0x100   :  { %1715 = vmatpush.msra.mxu0 %v4523_v44  ;;  %1796 = vmatpush.msra.mxu1 %v1795_v0  ;;  %v833_v59 = vadd.f32 %v832_v21, %v758_v32  ;;  %v873_v4 = vpop.f32.mrf.mxu3  ;;  %v1674_v32 = vld [vmem:[#allocation7 + $0x190] sm:$0xff]  ;;  %v1672_v0 = vld [vmem:[#allocation7 + $0x180] sm:$0xff] }
 0x101   :  { %1877 = vmatpush.msra.mxu2 %v4526_v63  ;;  %1922 = vmatpush.msra.mxu3 %v4491_v57  ;;  %v718_v54 = vpop.f32.mrf.mxu0  ;;  %v4657_v34 = vand.u32 4294901760, %v1672_v0 }
 0x102   :  { %1717 = vmatpush.msra.mxu0 %v4546_v22  ;;  %1802 = vmatpush.msra.mxu1 %v1801_v17  ;;  %v719_v21 = vadd.f32 %v718_v54, %v4552_v18  ;;  %v4622_v16 = vadd.f32 %v873_v4, %v833_v59  ;;  %v5677_v17 = vand.u32 4294901760, %v4585_v33  ;;  %v5678_v18 = vand.u32 4294901760, %v4582_v7 }
 0x103   :  { %1880 = vmatpush.msra.mxu2 %v4537_v43  ;;  %1924 = vmatpush.msra.mxu3 %v4498_v27 }
 0x104   :  { %5675 = vst [vmem:[#allocation27_spill] sm:$0xff] %v4622_v16  ;;  %1719 = vmatpush.msra.mxu0 %v4558_v6  ;;  %1808 = vmatpush.msra.mxu1 %v1807_v1  ;;  %v2112_v54 = vsub.f32 %v4585_v33, %v5677_v17  ;;  %v1830_v59 = vsub.f32 %v4582_v7, %v5678_v18  ;;  %v4644_v1 = vand.u32 4294901760, %v1674_v32  ;;  %v5680_v17 = vand.u32 4294901760, %v4596_v36 }
 0x105   :  { %1883 = vmatpush.msra.mxu2 %v4550_v20  ;;  %1926 = vmatpush.msra.mxu3 %v4510_v53  ;;  %v4655_v53 = vsub.f32 %v1676_v48, %v4629_v5  ;;  %v2135_v48 = vand.u32 4294901760, %v4642_v51 }
 0x106   :  { %1949 = vmatpush.msrb.mxu0 %v5679_v28  ;;  %1814 = vmatpush.msra.mxu1 %v1813_v60  ;;  %v2118_v18 = vsub.f32 %v4596_v36, %v5680_v17  ;;  %v763_v16 = vpop.f32.mrf.mxu1  ;;  %v5681_v28 = vand.u32 4294901760, %v4401_v42  ;;  %v2113_v17 = vand.u32 4294901760, %v2112_v54  ;;  %v1831_v4 = vand.u32 4294901760, %v1830_v59 }
 0x107   :  { %1886 = vmatpush.msra.mxu2 %v4577_v62  ;;  %1928 = vmatpush.msra.mxu3 %v4523_v44  ;;  %v764_v33 = vadd.f32 %v763_v16, %v719_v21  ;;  %v836_v60 = vpop.f32.mrf.mxu2  ;;  %v5682_v36 = vand.u32 4294901760, %v4610_v58  ;;  %v4668_v30 = vsub.f32 %v1674_v32, %v4644_v1  ;;  %v4670_v42 = vand.u32 4294901760, %v1670_v50 }
 0x108   :  { %1953 = vmatpush.msrb.mxu0 %v5681_v28  ;;  %1820 = vmatpush.msra.mxu1 %v1819_v15  ;;  %v5683_v16 = vand.u32 4294901760, %v4412_v49  ;;  %v2119_v15 = vand.u32 4294901760, %v2118_v18  ;;  %v2141_v32 = vand.u32 4294901760, %v4655_v53  ;;  %v4685_v49 = vand.u32 4294901760, %v1668_v38  ;;  %v1666_v28 = vld [vmem:[#allocation7 + $0x150] sm:$0xff] }
 0x109   :  { %v2124_v27 = vsub.f32 %v4610_v58, %v5682_v36  ;;  %1889 = vmatpush.msra.mxu2 %v4582_v7  ;;  %1930 = vmatpush.msra.mxu3 %v4546_v22  ;;  %v837_v21 = vadd.f32 %v836_v60, %v764_v33  ;;  %v5684_v36 = vand.u32 4294901760, %v4619_v29  ;;  %v4681_v33 = vsub.f32 %v1672_v0, %v4657_v34 }
 0x10a   :  { %1957 = vmatpush.msrb.mxu0 %v5683_v16  ;;  %v877_v59 = vpop.f32.mrf.mxu3  ;;  %1826 = vmatpush.msra.mxu1 %v1825_v23  ;;  %v5686_v18 = vand.u32 4294901760, %v4429_v47  ;;  %v2136_v16 = vsub.f32 %v4642_v51, %v2135_v48  ;;  %v5550_v0 = vand.u32 4294901760, %v4668_v30  ;;  %v4700_v47 = vand.u32 4294901760, %v1666_v28 }
 0x10b   :  { %2061 = vmatpush.msrb.mxu2 %v4560_v52  ;;  %v2130_v54 = vsub.f32 %v4619_v29, %v5684_v36  ;;  %1932 = vmatpush.msra.mxu3 %v4558_v6  ;;  %v4683_v60 = vadd.f32 %v877_v59, %v837_v21  ;;  %v2125_v23 = vand.u32 4294901760, %v2124_v27  ;;  %v4695_v21 = vsub.f32 %v1670_v50, %v4670_v42  ;;  %v1664_v59 = vld [vmem:[#allocation7 + $0x140] sm:$0xff] }
 0x10c   :  { %1961 = vmatpush.msrb.mxu0 %v5686_v18  ;;  %1832 = vmatpush.msra.mxu1 %v1831_v4  ;;  %v5687_v36 = vand.u32 4294901760, %v4443_v24  ;;  %v2142_v4 = vsub.f32 %v4655_v53, %v2141_v32  ;;  %v4708_v50 = vsub.f32 %v1668_v38, %v4685_v49  ;;  %v5688_v24 = vand.u32 4294901760, %v4456_v41  ;;  %v1660_v41 = vld [vmem:[#allocation7 + $0x120] sm:$0xff] }
 0x10d   :  { %5685 = vst [vmem:[#allocation28_spill] sm:$0xff] %v4683_v60  ;;  %2063 = vmatpush.msrb.mxu2 %v4569_v19  ;;  %2114 = vmatpush.msrb.mxu3 %v2113_v17  ;;  %v2131_v27 = vand.u32 4294901760, %v2130_v54  ;;  %v5551_v17 = vand.u32 4294901760, %v4681_v33  ;;  %v2148_v54 = vsub.f32 %v4668_v30, %v5550_v0  ;;  %v2159_v18 = vand.u32 4294901760, %v4695_v21 }
 0x10e   :  { %1965 = vmatpush.msrb.mxu0 %v5687_v36  ;;  %2020 = vmatpush.msrb.mxu1 %v4375_v37  ;;  %v1662_v37 = vld [vmem:[#allocation7 + $0x130] sm:$0xff]  ;;  %v4718_v36 = vand.u32 4294901760, %v1664_v59  ;;  %v5689_v38 = vand.u32 4294901760, %v4469_v12  ;;  %v5690_v12 = vand.u32 4294901760, %v4483_v46 }
 0x10f   :  { %2065 = vmatpush.msrb.mxu2 %v4587_v39  ;;  %2120 = vmatpush.msrb.mxu3 %v2119_v15  ;;  %v2137_v15 = vand.u32 4294901760, %v2136_v16  ;;  %v2154_v16 = vsub.f32 %v4681_v33, %v5551_v17  ;;  %v4731_v0 = vand.u32 4294901760, %v1662_v37  ;;  %v5691_v17 = vand.u32 4294901760, %v4495_v26 }
 0x110   :  { %1969 = vmatpush.msrb.mxu0 %v5688_v24  ;;  %2022 = vmatpush.msrb.mxu1 %v4384_v11  ;;  %v4724_v11 = vsub.f32 %v1666_v28, %v4700_v47  ;;  %v2165_v24 = vand.u32 4294901760, %v4708_v50  ;;  %v2160_v28 = vsub.f32 %v4695_v21, %v2159_v18 }
 0x111   :  { %2067 = vmatpush.msrb.mxu2 %v4598_v2  ;;  %2126 = vmatpush.msrb.mxu3 %v2125_v23  ;;  %v2143_v23 = vand.u32 4294901760, %v2142_v4  ;;  %v4743_v4 = vand.u32 4294901760, %v1660_v41  ;;  %v2155_v46 = vand.u32 4294901760, %v2154_v16 }
 0x112   :  { %1973 = vmatpush.msrb.mxu0 %v5689_v38  ;;  %2024 = vmatpush.msrb.mxu1 %v4390_v31  ;;  %v2149_v31 = vand.u32 4294901760, %v2148_v54  ;;  %v1658_v38 = vld [vmem:[#allocation7 + $0x110] sm:$0xff]  ;;  %v5692_v54 = vand.u32 4294901760, %v4507_v9 }
 0x113   :  { %2069 = vmatpush.msrb.mxu2 %v4614_v40  ;;  %2132 = vmatpush.msrb.mxu3 %v2131_v27  ;;  %v4741_v27 = vsub.f32 %v1664_v59, %v4718_v36  ;;  %v4754_v59 = vsub.f32 %v1662_v37, %v4731_v0  ;;  %v4759_v26 = vand.u32 4294901760, %v1658_v38  ;;  %v4764_v16 = vsub.f32 %v1660_v41, %v4743_v4 }
 0x114   :  { %1977 = vmatpush.msrb.mxu0 %v5690_v12  ;;  %2026 = vmatpush.msrb.mxu1 %v4406_v10  ;;  %v2171_v10 = vand.u32 4294901760, %v4724_v11  ;;  %v5693_v37 = vand.u32 4294901760, %v4519_v56  ;;  %v5694_v41 = vand.u32 4294901760, %v4526_v63 }
 0x115   :  { %2071 = vmatpush.msrb.mxu2 %v4629_v5  ;;  %2138 = vmatpush.msrb.mxu3 %v2137_v15  ;;  %v2166_v15 = vsub.f32 %v4708_v50, %v2165_v24  ;;  %v2183_v12 = vand.u32 4294901760, %v4754_v59  ;;  %v4780_v56 = vsub.f32 %v1658_v38, %v4759_v26 }
 0x116   :  { %1981 = vmatpush.msrb.mxu0 %v5691_v17  ;;  %2028 = vmatpush.msrb.mxu1 %v4416_v3  ;;  %v1656_v3 = vld [vmem:[#allocation7 + $0x100] sm:$0xff]  ;;  %v2161_v17 = vand.u32 4294901760, %v2160_v28  ;;  %v2189_v28 = vand.u32 4294901760, %v4764_v16 }
 0x117   :  { %2073 = vmatpush.msrb.mxu2 %v4644_v1  ;;  %2144 = vmatpush.msrb.mxu3 %v2143_v23  ;;  %v2177_v23 = vand.u32 4294901760, %v4741_v27  ;;  %v2167_v9 = vand.u32 4294901760, %v2166_v15  ;;  %v5696_v15 = vand.u32 4294901760, %v4550_v20 }
 0x118   :  { %1985 = vmatpush.msrb.mxu0 %v5692_v54  ;;  %2030 = vmatpush.msrb.mxu1 %v4426_v14  ;;  %v2172_v14 = vsub.f32 %v4724_v11, %v2171_v10  ;;  %v2190_v54 = vsub.f32 %v4764_v16, %v2189_v28 }
 0x119   :  { %2075 = vmatpush.msrb.mxu2 %v4657_v34  ;;  %2150 = vmatpush.msrb.mxu3 %v2149_v31  ;;  %v4774_v31 = vand.u32 4294901760, %v1656_v3 }
 0x11a   :  { %1989 = vmatpush.msrb.mxu0 %v5693_v37  ;;  %2032 = vmatpush.msrb.mxu1 %v4440_v13  ;;  %v2178_v13 = vsub.f32 %v4741_v27, %v2177_v23  ;;  %v2173_v63 = vand.u32 4294901760, %v2172_v14  ;;  %v5698_v37 = vld [vmem:[#allocation11_spill] sm:$0xff]  ;;  %v2191_v14 = vand.u32 4294901760, %v2190_v54 }
 0x11b   :  { %2077 = vmatpush.msrb.mxu2 %v4670_v42  ;;  %2156 = vmatpush.msrb.mxu3 %v2155_v46  ;;  %v5695_v46 = vand.u32 4294901760, %v4537_v43  ;;  %v4795_v38 = vsub.f32 %v1656_v3, %v4774_v31  ;;  %v2195_v43 = vand.u32 4294901760, %v4780_v56  ;;  %v5697_v3 = vand.u32 4294901760, %v4577_v62  ;;  %v5700_v62 = vld [vmem:[#allocation24_spill] sm:$0xff] }
 0x11c   :  { %1993 = vmatpush.msrb.mxu0 %v5694_v41  ;;  %2034 = vmatpush.msrb.mxu1 %v4452_v55  ;;  %v2184_v55 = vsub.f32 %v4754_v59, %v2183_v12  ;;  %v5701_v41 = vld [vmem:[#allocation25_spill] sm:$0xff] }
 0x11d   :  { %2079 = vmatpush.msrb.mxu2 %v4685_v49  ;;  %2162 = vmatpush.msrb.mxu3 %v2161_v17  ;;  %v2201_v17 = vand.u32 4294901760, %v4795_v38  ;;  %v5707_v54 = vand.u32 4294901760, %v5701_v41 }
 0x11e   :  { %1997 = vmatpush.msrb.mxu0 %v5695_v46  ;;  %2036 = vmatpush.msrb.mxu1 %v4465_v8  ;;  %v2179_v8 = vand.u32 4294901760, %v2178_v13  ;;  %v2185_v20 = vand.u32 4294901760, %v2184_v55  ;;  %v5702_v13 = vld [vmem:[#allocation23_spill] sm:$0xff] }
 0x11f   :  { %2081 = vmatpush.msrb.mxu2 %v4700_v47  ;;  %2168 = vmatpush.msrb.mxu3 %v2167_v9  ;;  %v5699_v9 = vand.u32 4294901760, %v4582_v7  ;;  %v5704_v7 = vld [vmem:[#allocation26_spill] sm:$0xff] }
 0x120   :  { %1892 = vmatmul.f32.vlgmr.msra.gmra.mxu2 %v3662_v61  ;;  %2001 = vmatpush.msrb.mxu0 %v5696_v15  ;;  %v5705_v15 = vld [vmem:[#allocation17_spill] sm:$0xff] }
 0x121   :  { %2038 = vmatpush.msrb.mxu1 %v4479_v45  ;;  %2083 = vmatpush.msrb.mxu2 %v4718_v36  ;;  %v2196_v45 = vsub.f32 %v4780_v56, %v2195_v43 }
 0x122   :  { %2174 = vmatpush.msrb.mxu3 %v2173_v63  ;;  %1725 = vmatmul.f32.vlgmr.msra.gmra.mxu0 %v3734_v25  ;;  %v5703_v63 = vld [vmem:[#allocation13_spill] sm:$0xff] }
 0x123   :  { %1936 = vmatmul.f32.vlgmr.msra.gmra.mxu3 %v3687_v35  ;;  %2005 = vmatpush.msrb.mxu0 %v5697_v3  ;;  %v2197_v46 = vand.u32 4294901760, %v2196_v45  ;;  %v5708_v3 = vld [vmem:[#allocation12_spill] sm:$0xff]  ;;  %v5711_v45 = vld [vmem:[#allocation19_spill] sm:$0xff] }
 0x124   :  { %2040 = vmatpush.msrb.mxu1 %v4491_v57  ;;  %2085 = vmatpush.msrb.mxu2 %v4731_v0  ;;  %v2202_v57 = vsub.f32 %v4795_v38, %v2201_v17 }
 0x125   :  { %2180 = vmatpush.msrb.mxu3 %v2179_v8  ;;  %1834 = vmatmul.f32.vlgmr.msra.gmra.mxu1 %v5698_v37  ;;  %v5706_v8 = vld [vmem:[#allocation14_spill] sm:$0xff] }
 0x126   :  { %2009 = vmatpush.msrb.mxu0 %v5699_v9  ;;  %2042 = vmatpush.msrb.mxu1 %v5700_v62  ;;  %v2203_v55 = vand.u32 4294901760, %v2202_v57 }
 0x127   :  { %2087 = vmatpush.msrb.mxu2 %v4743_v4  ;;  %2186 = vmatpush.msrb.mxu3 %v2185_v20  ;;  %v5710_v20 = vand.u32 4294901760, %v4610_v58 }
 0x128   :  { %2216 = vmatpush.msra.mxu0 %v5701_v41  ;;  %2044 = vmatpush.msrb.mxu1 %v5702_v13 }
 0x129   :  { %2089 = vmatpush.msrb.mxu2 %v4759_v26  ;;  %2192 = vmatpush.msrb.mxu3 %v2191_v14  ;;  %v5712_v14 = vand.u32 4294901760, %v4619_v29 }
 0x12a   :  { %1897 = vmatmul.f32.gmra.mxu2 %v5703_v63  ;;  %2219 = vmatpush.msra.mxu0 %v5704_v7  ;;  %v1671_v63 = vld [vmem:[#allocation7 + $0x178] sm:$0xff] }
 0x12b   :  { %2046 = vmatpush.msrb.mxu1 %v4523_v44  ;;  %2091 = vmatpush.msrb.mxu2 %v4774_v31  ;;  %v5709_v44 = vand.u32 4294901760, %v5704_v7  ;;  %v1645_v7 = vld [vmem:[#allocation7 + $0xa8] sm:$0xff] }
 0x12c   :  { %2198 = vmatpush.msrb.mxu3 %v2197_v46  ;;  %1733 = vmatmul.f32.gmra.mxu0 %v5705_v15 }
 0x12d   :  { %1942 = vmatmul.f32.gmra.mxu3 %v5706_v8  ;;  %2222 = vmatpush.msra.mxu0 %v4610_v58 }
 0x12e   :  { %2321 = vmatpush.msra.mxu2 %v5707_v54  ;;  %2048 = vmatpush.msrb.mxu1 %v4546_v22  ;;  %v5718_v54 = vld [vmem:[#allocation16_spill] sm:$0xff] }
 0x12f   :  { %2204 = vmatpush.msrb.mxu3 %v2203_v55  ;;  %1838 = vmatmul.f32.gmra.mxu1 %v5708_v3 }
 0x130   :  { %2225 = vmatpush.msra.mxu0 %v4619_v29  ;;  %2325 = vmatpush.msra.mxu2 %v5709_v44  ;;  %v1643_v44 = vld [vmem:[#allocation7 + $0x98] sm:$0xff] }
 0x131   :  { %2392 = vmatpush.msra.mxu3 %v4560_v52  ;;  %2050 = vmatpush.msrb.mxu1 %v4558_v6 }
 0x132   :  { %2228 = vmatpush.msra.mxu0 %v4642_v51  ;;  %2329 = vmatpush.msra.mxu2 %v5710_v20 }
 0x133   :  { %2274 = vmatpush.msra.mxu1 %v4560_v52  ;;  %2394 = vmatpush.msra.mxu3 %v4569_v19  ;;  %v918_v22 = vpop.f32.mrf.mxu0  ;;  %v5713_v52 = vld [vmem:[#allocation15_spill] sm:$0xff] }
 0x134   :  { %2097 = vmatmul.f32.vlgmr.msrb.gmra.mxu2 %v5711_v45  ;;  %2231 = vmatpush.msra.mxu0 %v4655_v53  ;;  %v5715_v53 = vand.u32 4294901760, %v4681_v33 }
 0x135   :  { %2276 = vmatpush.msra.mxu1 %v4569_v19  ;;  %2333 = vmatpush.msra.mxu2 %v5712_v14  ;;  %v1641_v14 = vld [vmem:[#allocation7 + $0x88] sm:$0xff] }
 0x136   :  { %2396 = vmatpush.msra.mxu3 %v4587_v39  ;;  %2011 = vmatmul.f32.vlgmr.msrb.gmra.mxu0 %v5698_v37  ;;  %v1027_v6 = vpop.f32.mrf.mxu1 }
 0x137   :  { %2206 = vmatmul.f32.vlgmr.msrb.gmra.mxu3 %v5713_v52  ;;  %2234 = vmatpush.msra.mxu0 %v4668_v30  ;;  %v1028_v58 = vadd.f32 %v1027_v6, %v918_v22  ;;  %v1085_v9 = vpop.f32.mrf.mxu2  ;;  %v4943_v22 = vand.u32 4294901760, %v1645_v7 }
 0x138   :  { %2278 = vmatpush.msra.mxu1 %v4587_v39  ;;  %2337 = vmatpush.msra.mxu2 %v2135_v48  ;;  %v5714_v39 = vand.u32 4294901760, %v4668_v30 }
 0x139   :  { %2398 = vmatpush.msra.mxu3 %v4598_v2  ;;  %2052 = vmatmul.f32.vlgmr.msrb.gmra.mxu1 %v5698_v37  ;;  %v1086_v19 = vadd.f32 %v1085_v9, %v1028_v58  ;;  %v4969_v58 = vand.u32 4294901760, %v1641_v14 }
 0x13a   :  { %2237 = vmatpush.msra.mxu0 %v4681_v33  ;;  %2280 = vmatpush.msra.mxu1 %v4598_v2  ;;  %v1129_v29 = vpop.f32.mrf.mxu3 }
 0x13b   :  { %2341 = vmatpush.msra.mxu2 %v2141_v32  ;;  %2400 = vmatpush.msra.mxu3 %v4614_v40  ;;  %v1130_v62 = vadd.f32 %v1129_v29, %v1086_v19  ;;  %v4973_v19 = vsub.f32 %v1645_v7, %v4943_v22  ;;  %v5721_v7 = vld [vmem:[#allocation20_spill] sm:$0xff] }
 0x13c   :  { %2240 = vmatpush.msra.mxu0 %v4695_v21  ;;  %2282 = vmatpush.msra.mxu1 %v4614_v40  ;;  %v1651_v21 = vld [vmem:[#allocation7 + $0xd8] sm:$0xff] }
 0x13d   :  { %2345 = vmatpush.msra.mxu2 %v5714_v39  ;;  %2402 = vmatpush.msra.mxu3 %v4629_v5  ;;  %v926_v51 = vpop.f32.mrf.mxu0  ;;  %v1637_v39 = vld [vmem:[#allocation7 + $0x68] sm:$0xff] }
 0x13e   :  { %2243 = vmatpush.msra.mxu0 %v4708_v50  ;;  %2284 = vmatpush.msra.mxu1 %v4629_v5  ;;  %v1655_v5 = vld [vmem:[#allocation7 + $0xf8] sm:$0xff] }
 0x13f   :  { %2349 = vmatpush.msra.mxu2 %v5715_v53  ;;  %2404 = vmatpush.msra.mxu3 %v4644_v1  ;;  %v4892_v33 = vand.u32 4294901760, %v1655_v5 }
 0x140   :  { %2246 = vmatpush.msra.mxu0 %v4724_v11  ;;  %2286 = vmatpush.msra.mxu1 %v4644_v1  ;;  %v1031_v2 = vpop.f32.mrf.mxu1  ;;  %v1653_v1 = vld [vmem:[#allocation7 + $0xe8] sm:$0xff] }
 0x141   :  { %2353 = vmatpush.msra.mxu2 %v2159_v18  ;;  %2406 = vmatpush.msra.mxu3 %v4657_v34  ;;  %v1032_v40 = vadd.f32 %v1031_v2, %v926_v51  ;;  %v1090_v48 = vpop.f32.mrf.mxu2  ;;  %v5716_v18 = vld [vmem:[#allocation22_spill] sm:$0xff] }
 0x142   :  { %2249 = vmatpush.msra.mxu0 %v4741_v27  ;;  %2288 = vmatpush.msra.mxu1 %v4657_v34 }
 0x143   :  { %2357 = vmatpush.msra.mxu2 %v2165_v24  ;;  %2408 = vmatpush.msra.mxu3 %v4670_v42  ;;  %v1091_v30 = vadd.f32 %v1090_v48, %v1032_v40  ;;  %v4907_v24 = vand.u32 4294901760, %v1651_v21 }
 0x144   :  { %2015 = vmatmul.f32.gmra.mxu0 %v5708_v3  ;;  %2290 = vmatpush.msra.mxu1 %v4670_v42  ;;  %v1135_v32 = vpop.f32.mrf.mxu3  ;;  %v4901_v42 = vand.u32 4294901760, %v1653_v1 }
 0x145   :  { %2252 = vmatpush.msra.mxu0 %v4754_v59  ;;  %2361 = vmatpush.msra.mxu2 %v2171_v10  ;;  %v4894_v34 = vadd.f32 %v1135_v32, %v1091_v30  ;;  %v1649_v10 = vld [vmem:[#allocation7 + $0xc8] sm:$0xff]  ;;  %v4929_v46 = vsub.f32 %v1651_v21, %v4907_v24  ;;  %v5719_v30 = vld [vmem:[#allocation18_spill] sm:$0xff]  ;;  %v4996_v32 = vand.u32 4294901760, %v1637_v39  ;;  %v5552_v21 = vand.u32 4294901760, %v4973_v19 }
 0x146   :  { %2410 = vmatpush.msra.mxu3 %v4685_v49  ;;  %2292 = vmatpush.msra.mxu1 %v4685_v49  ;;  %v4910_v49 = vsub.f32 %v1655_v5, %v4892_v33  ;;  %v4918_v57 = vsub.f32 %v1653_v1, %v4901_v42  ;;  %v4923_v59 = vand.u32 4294901760, %v1649_v10  ;;  %v1635_v5 = vld [vmem:[#allocation7 + $0x58] sm:$0xff] }
 0x147   :  { %2255 = vmatpush.msra.mxu0 %v4764_v16  ;;  %2365 = vmatpush.msra.mxu2 %v2177_v23  ;;  %v1204_v50 = vpop.f32.mrf.mxu0  ;;  %v5717_v23 = vld [vmem:[#allocation10_spill] sm:$0xff] }
 0x148   :  { %2412 = vmatpush.msra.mxu3 %v4700_v47  ;;  %2105 = vmatmul.f32.gmra.mxu2 %v5716_v18  ;;  %v1205_v11 = vadd.f32 %v1204_v50, %v1130_v62  ;;  %v1679_v18 = vld [vmem:[#allocation7 + $0x1b8] sm:$0xff] }
 0x149   :  { %2258 = vmatpush.msra.mxu0 %v4780_v56  ;;  %2294 = vmatpush.msra.mxu1 %v4700_v47  ;;  %v1647_v47 = vld [vmem:[#allocation7 + $0xb8] sm:$0xff] }
 0x14a   :  { %2369 = vmatpush.msra.mxu2 %v2183_v12  ;;  %2414 = vmatpush.msra.mxu3 %v4718_v36  ;;  %v1245_v27 = vpop.f32.mrf.mxu1  ;;  %v5559_v12 = vand.u32 4294901760, %v4910_v49 }
 0x14b   :  { %2210 = vmatmul.f32.gmra.mxu3 %v5717_v23  ;;  %2261 = vmatpush.msra.mxu0 %v4795_v38  ;;  %v1246_v41 = vadd.f32 %v1245_v27, %v1205_v11  ;;  %v1290_v13 = vpop.f32.mrf.mxu2 }
 0x14c   :  { %2296 = vmatpush.msra.mxu1 %v4718_v36  ;;  %2373 = vmatpush.msra.mxu2 %v2189_v28  ;;  %v4933_v36 = vand.u32 4294901760, %v1647_v47  ;;  %v5557_v28 = vand.u32 4294901760, %v4918_v57  ;;  %v2484_v56 = vsub.f32 %v4910_v49, %v5559_v12 }
 0x14d   :  { %2416 = vmatpush.msra.mxu3 %v4731_v0  ;;  %2056 = vmatmul.f32.gmra.mxu1 %v5708_v3  ;;  %v1291_v55 = vadd.f32 %v1290_v13, %v1246_v41  ;;  %v1631_v41 = vld [vmem:[#allocation7 + $0x38] sm:$0xff] }
 0x14e   :  { %2264 = vmatmul.f32.vlgmr.msra.gmra.mxu0 %v5718_v54  ;;  %2298 = vmatpush.msra.mxu1 %v4731_v0  ;;  %v1399_v16 = vpop.f32.mrf.mxu3  ;;  %v4946_v0 = vsub.f32 %v1649_v10, %v4923_v59  ;;  %v4960_v6 = vsub.f32 %v1647_v47, %v4933_v36  ;;  %v2490_v38 = vsub.f32 %v4918_v57, %v5557_v28  ;;  %v2485_v29 = vand.u32 4294901760, %v2484_v56  ;;  %v1687_v28 = vld [vmem:[#allocation7 + $0x1f8] sm:$0xff] }
 0x14f   :  { %2433 = vmatpush.msrb.mxu0 %v4892_v33  ;;  %2377 = vmatpush.msra.mxu2 %v2195_v43  ;;  %v4939_v20 = vadd.f32 %v1399_v16, %v1291_v55  ;;  %v5556_v43 = vand.u32 4294901760, %v4929_v46  ;;  %v5008_v10 = vand.u32 4294901760, %v1635_v5  ;;  %v2514_v16 = vsub.f32 %v4973_v19, %v5552_v21 }
 0x150   :  { %2418 = vmatpush.msra.mxu3 %v4743_v4  ;;  %2300 = vmatpush.msra.mxu1 %v4743_v4  ;;  %v4957_v4 = vand.u32 4294901760, %v1643_v44  ;;  %v5555_v9 = vand.u32 4294901760, %v4946_v0  ;;  %v5553_v53 = vand.u32 4294901760, %v4960_v6  ;;  %v2491_v48 = vand.u32 4294901760, %v2490_v38 }
 0x151   :  { %2435 = vmatpush.msrb.mxu0 %v4901_v42  ;;  %2381 = vmatpush.msra.mxu2 %v2201_v17  ;;  %v1639_v17 = vld [vmem:[#allocation7 + $0x78] sm:$0xff]  ;;  %v2496_v62 = vsub.f32 %v4929_v46, %v5556_v43  ;;  %v5024_v56 = vsub.f32 %v1637_v39, %v4996_v32  ;;  %v5027_v38 = vand.u32 4294901760, %v1631_v41  ;;  %v5036_v39 = vsub.f32 %v1635_v5, %v5008_v10 }
 0x152   :  { %2420 = vmatpush.msra.mxu3 %v4759_v26  ;;  %2383 = vmatmul.f32.vlgmr.msra.gmra.mxu2 %v5713_v52  ;;  %v4982_v51 = vand.u32 4294901760, %v1639_v17  ;;  %v4986_v2 = vsub.f32 %v1643_v44, %v4957_v4  ;;  %v2502_v1 = vsub.f32 %v4946_v0, %v5555_v9  ;;  %v2508_v11 = vsub.f32 %v4960_v6, %v5553_v53 }
 0x153   :  { %2437 = vmatpush.msrb.mxu0 %v4907_v24  ;;  %2588 = vmatpush.msrb.mxu2 %v4910_v49  ;;  %v2497_v50 = vand.u32 4294901760, %v2496_v62  ;;  %5722 = vst [vmem:[#allocation24_spill] sm:$0xff] %v5027_v38  ;;  %v5561_v9 = vand.u32 4294901760, %v5024_v56  ;;  %v5077_v60 = vand.u32 4294901760, %v1687_v28 }
 0x154   :  { %2302 = vmatpush.msra.mxu1 %v4759_v26  ;;  %2422 = vmatpush.msra.mxu3 %v4774_v31  ;;  %v5554_v27 = vand.u32 4294901760, %v4986_v2  ;;  %v5012_v47 = vsub.f32 %v1639_v17, %v4982_v51  ;;  %v2503_v55 = vand.u32 4294901760, %v2502_v1  ;;  %v2509_v17 = vand.u32 4294901760, %v2508_v11 }
 0x155   :  { %2424 = vmatmul.f32.vlgmr.msra.gmra.mxu3 %v5713_v52  ;;  %2439 = vmatpush.msrb.mxu0 %v4923_v59  ;;  %v1208_v26 = vpop.f32.mrf.mxu0 }
 0x156   :  { %2591 = vmatpush.msrb.mxu2 %v4918_v57  ;;  %2646 = vmatpush.msrb.mxu3 %v4892_v33  ;;  %v1209_v40 = vadd.f32 %v1208_v26, %v4894_v34  ;;  %v5000_v34 = vsub.f32 %v1641_v14, %v4969_v58  ;;  %v1629_v14 = vld [vmem:[#allocation7 + $0x28] sm:$0xff]  ;;  %v5560_v62 = vand.u32 4294901760, %v5012_v47 }
 0x157   :  { %2304 = vmatpush.msra.mxu1 %v4774_v31  ;;  %2441 = vmatpush.msrb.mxu0 %v4933_v36  ;;  %v1633_v31 = vld [vmem:[#allocation7 + $0x48] sm:$0xff] }
 0x158   :  { %2308 = vmatmul.f32.vlgmr.msra.gmra.mxu1 %v5719_v30  ;;  %2594 = vmatpush.msrb.mxu2 %v4929_v46  ;;  %v5015_v13 = vand.u32 4294901760, %v1633_v31  ;;  %v5558_v44 = vand.u32 4294901760, %v5000_v34  ;;  %v1681_v30 = vld [vmem:[#allocation7 + $0x1c8] sm:$0xff] }
 0x159   :  { %2486 = vmatpush.msrb.mxu1 %v2485_v29  ;;  %2648 = vmatpush.msrb.mxu3 %v4901_v42  ;;  %v2520_v29 = vsub.f32 %v4986_v2, %v5554_v27  ;;  %v2515_v27 = vand.u32 4294901760, %v2514_v16  ;;  %v5121_v3 = vand.u32 4294901760, %v1681_v30 }
 0x15a   :  { %2443 = vmatpush.msrb.mxu0 %v4943_v22  ;;  %2597 = vmatpush.msrb.mxu2 %v4946_v0  ;;  %5720 = vst [vmem:[#allocation11_spill] sm:$0xff] %v5015_v13  ;;  %v5043_v1 = vsub.f32 %v1633_v31, %v5015_v13  ;;  %v2526_v5 = vsub.f32 %v5000_v34, %v5558_v44  ;;  %v5723_v31 = vld [vmem:[#allocation21_spill] sm:$0xff] }
 0x15b   :  { %2492 = vmatpush.msrb.mxu1 %v2491_v48  ;;  %2650 = vmatpush.msrb.mxu3 %v4907_v24  ;;  %v5040_v48 = vand.u32 4294901760, %v1629_v14  ;;  %v2521_v16 = vand.u32 4294901760, %v2520_v29  ;;  %v2532_v44 = vsub.f32 %v5012_v47, %v5560_v62  ;;  %v1685_v29 = vld [vmem:[#allocation7 + $0x1e8] sm:$0xff]  ;;  %v2538_v62 = vsub.f32 %v5024_v56, %v5561_v9 }
 0x15c   :  { %2269 = vmatmul.f32.gmra.mxu0 %v5721_v7  ;;  %2387 = vmatmul.f32.gmra.mxu2 %v5717_v23 }
 0x15d   :  { %2445 = vmatpush.msrb.mxu0 %v4957_v4  ;;  %2498 = vmatpush.msrb.mxu1 %v2497_v50  ;;  %v1627_v50 = vld [vmem:[#allocation7 + $0x18] sm:$0xff] }
 0x15e   :  { %2600 = vmatpush.msrb.mxu2 %v4960_v6  ;;  %2652 = vmatpush.msrb.mxu3 %v4923_v59  ;;  %v1249_v26 = vpop.f32.mrf.mxu1  ;;  %v5060_v12 = vand.u32 4294901760, %v1627_v50 }
 0x15f   :  { %2428 = vmatmul.f32.gmra.mxu3 %v5717_v23  ;;  %2447 = vmatpush.msrb.mxu0 %v4969_v58  ;;  %v1250_v11 = vadd.f32 %v1249_v26, %v1209_v40  ;;  %v1457_v21 = vpop.f32.mrf.mxu0  ;;  %v1298_v53 = vpop.f32.mrf.mxu2  ;;  %v5054_v40 = vsub.f32 %v1631_v41, %v5027_v38  ;;  %v1625_v26 = vld [vmem:[#allocation7 + $0x8] sm:$0xff]  ;;  %v5067_v41 = vsub.f32 %v1629_v14, %v5040_v48  ;;  %v5725_v14 = vand.u32 4294901760, %v5043_v1 }
 0x160   :  { %2504 = vmatpush.msrb.mxu1 %v2503_v55  ;;  %2603 = vmatpush.msrb.mxu2 %v4973_v19  ;;  %v1458_v43 = vadd.f32 %v1457_v21, %v4939_v20  ;;  %v5075_v20 = vand.u32 4294901760, %v1625_v26  ;;  %v5087_v9 = vsub.f32 %v1627_v50, %v5060_v12  ;;  %v5102_v50 = vsub.f32 %v1687_v28, %v5077_v60  ;;  %v1677_v28 = vld [vmem:[#allocation7 + $0x1a8] sm:$0xff] }
 0x161   :  { %2654 = vmatpush.msrb.mxu3 %v4933_v36  ;;  %2314 = vmatmul.f32.gmra.mxu1 %v5723_v31  ;;  %v1299_v55 = vadd.f32 %v1298_v53, %v1250_v11  ;;  %v2527_v11 = vand.u32 4294901760, %v2526_v5  ;;  %v5724_v5 = vand.u32 4294901760, %v5036_v39  ;;  %v5089_v53 = vand.u32 4294901760, %v1685_v29 }
 0x162   :  { %2449 = vmatpush.msrb.mxu0 %v4982_v51  ;;  %2510 = vmatpush.msrb.mxu1 %v2509_v17  ;;  %v1403_v21 = vpop.f32.mrf.mxu3  ;;  %v2550_v31 = vsub.f32 %v5043_v1, %v5725_v14  ;;  %5726 = vst [vmem:[#allocation25_spill] sm:$0xff] %v5102_v50  ;;  %v5727_v14 = vand.u32 4294901760, %v5054_v40  ;;  %v5146_v15 = vand.u32 4294901760, %v1677_v28 }
 0x163   :  { %2606 = vmatpush.msrb.mxu2 %v4986_v2  ;;  %2656 = vmatpush.msrb.mxu3 %v4943_v22  ;;  %v5069_v17 = vadd.f32 %v1403_v21, %v1299_v55  ;;  %v1683_v55 = vld [vmem:[#allocation7 + $0x1d8] sm:$0xff]  ;;  %v2544_v21 = vsub.f32 %v5036_v39, %v5724_v5  ;;  %v5099_v5 = vsub.f32 %v1625_v26, %v5075_v20 }
 0x164   :  { %2451 = vmatpush.msrb.mxu0 %v4996_v32  ;;  %2516 = vmatpush.msrb.mxu1 %v2515_v27  ;;  %v2533_v27 = vand.u32 4294901760, %v2532_v44  ;;  %v2539_v44 = vand.u32 4294901760, %v2538_v62  ;;  %v5104_v7 = vand.u32 4294901760, %v1683_v55  ;;  %v5114_v26 = vsub.f32 %v1685_v29, %v5089_v53 }
 0x165   :  { %2609 = vmatpush.msrb.mxu2 %v5000_v34  ;;  %2658 = vmatpush.msrb.mxu3 %v4957_v4  ;;  %v2545_v62 = vand.u32 4294901760, %v2544_v21  ;;  %v2551_v52 = vand.u32 4294901760, %v2550_v31 }
 0x166   :  { %2453 = vmatpush.msrb.mxu0 %v5008_v10  ;;  %2522 = vmatpush.msrb.mxu1 %v2521_v16  ;;  %v2556_v16 = vsub.f32 %v5054_v40, %v5727_v14  ;;  %5728 = vst [vmem:[#allocation23_spill] sm:$0xff] %v5114_v26  ;;  %v5729_v14 = vand.u32 4294901760, %v5067_v41 }
 0x167   :  { %2612 = vmatpush.msrb.mxu2 %v5012_v47  ;;  %2660 = vmatpush.msrb.mxu3 %v4969_v58 }
 0x168   :  { %2455 = vmatpush.msrb.mxu0 %v5015_v13  ;;  %2528 = vmatpush.msrb.mxu1 %v2527_v11  ;;  %v2562_v45 = vsub.f32 %v5067_v41, %v5729_v14  ;;  %v2557_v31 = vand.u32 4294901760, %v2556_v16  ;;  %v5131_v14 = vand.u32 4294901760, %v1679_v18  ;;  %v5144_v16 = vsub.f32 %v1681_v30, %v5121_v3 }
 0x169   :  { %2615 = vmatpush.msrb.mxu2 %v5024_v56  ;;  %2662 = vmatpush.msrb.mxu3 %v4982_v51  ;;  %v1501_v54 = vpop.f32.mrf.mxu1  ;;  %v1576_v11 = vpop.f32.mrf.mxu2 }
 0x16a   :  { %2457 = vmatpush.msrb.mxu0 %v5027_v38  ;;  %2534 = vmatpush.msrb.mxu1 %v2533_v27  ;;  %v1502_v23 = vadd.f32 %v1501_v54, %v1458_v43  ;;  %v5127_v54 = vsub.f32 %v1683_v55, %v5104_v7  ;;  %v1675_v27 = vld [vmem:[#allocation7 + $0x198] sm:$0xff]  ;;  %v1673_v55 = vld [vmem:[#allocation7 + $0x188] sm:$0xff]  ;;  %v5159_v30 = vsub.f32 %v1679_v18, %v5131_v14  ;;  %v5187_v18 = vand.u32 4294901760, %v1671_v63 }
 0x16b   :  { %2618 = vmatpush.msrb.mxu2 %v5036_v39  ;;  %2664 = vmatpush.msrb.mxu3 %v4996_v32 }
 0x16c   :  { %2459 = vmatpush.msrb.mxu0 %v5040_v48  ;;  %2540 = vmatpush.msrb.mxu1 %v2539_v44  ;;  %v1577_v43 = vadd.f32 %v1576_v11, %v1502_v23  ;;  %v1617_v21 = vpop.f32.mrf.mxu3  ;;  %v5730_v44 = vand.u32 4294901760, %v5087_v9 }
 0x16d   :  { %2621 = vmatpush.msrb.mxu2 %v5043_v1  ;;  %2666 = vmatpush.msrb.mxu3 %v5008_v10  ;;  %v1462_v8 = vpop.f32.mrf.mxu0 }
 0x16e   :  { %2461 = vmatpush.msrb.mxu0 %v5060_v12  ;;  %2546 = vmatpush.msrb.mxu1 %v2545_v62  ;;  %v2568_v29 = vsub.f32 %v5087_v9, %v5730_v44  ;;  %v1463_v23 = vadd.f32 %v1462_v8, %v5069_v17  ;;  %v5139_v11 = vadd.f32 %v1617_v21, %v1577_v43  ;;  %v2563_v62 = vand.u32 4294901760, %v2562_v45 }
 0x16f   :  { %2624 = vmatpush.msrb.mxu2 %v5054_v40  ;;  %2668 = vmatpush.msrb.mxu3 %v5015_v13  ;;  %v5732_v44 = vand.u32 4294901760, %v5102_v50  ;;  %v5733_v17 = vand.u32 4294901760, %v5099_v5  ;;  %v5734_v45 = vand.u32 4294901760, %v4910_v49  ;;  %v5174_v49 = vand.u32 4294901760, %v1673_v55 }
 0x170   :  { %5731 = vst [vmem:[#allocation26_spill] sm:$0xff] %v5139_v11  ;;  %2463 = vmatpush.msrb.mxu0 %v5075_v20  ;;  %2552 = vmatpush.msrb.mxu1 %v2551_v52  ;;  %v5161_v52 = vand.u32 4294901760, %v1675_v27  ;;  %v5735_v11 = vand.u32 4294901760, %v5114_v26 }
 0x171   :  { %v2856_v8 = vsub.f32 %v5102_v50, %v5732_v44  ;;  %v2574_v43 = vsub.f32 %v5099_v5, %v5733_v17  ;;  %2627 = vmatpush.msrb.mxu2 %v5067_v41  ;;  %2670 = vmatpush.msrb.mxu3 %v5027_v38  ;;  %v2569_v44 = vand.u32 4294901760, %v2568_v29  ;;  %v5172_v38 = vsub.f32 %v1677_v28, %v5146_v15 }
 0x172   :  { %2693 = vmatpush.msra.mxu0 %v5734_v45  ;;  %2558 = vmatpush.msrb.mxu1 %v2557_v31  ;;  %v2862_v17 = vsub.f32 %v5114_v26, %v5735_v11  ;;  %v1507_v21 = vpop.f32.mrf.mxu1  ;;  %v5736_v29 = vand.u32 4294901760, %v4918_v57  ;;  %v5737_v26 = vand.u32 4294901760, %v5127_v54  ;;  %v2879_v28 = vand.u32 4294901760, %v5159_v30  ;;  %v1669_v57 = vld [vmem:[#allocation7 + $0x168] sm:$0xff] }
 0x173   :  { %2630 = vmatpush.msrb.mxu2 %v5087_v9  ;;  %2672 = vmatpush.msrb.mxu3 %v5040_v48  ;;  %v1508_v50 = vadd.f32 %v1507_v21, %v1463_v23  ;;  %v1580_v31 = vpop.f32.mrf.mxu2  ;;  %v2857_v11 = vand.u32 4294901760, %v2856_v8  ;;  %v2575_v45 = vand.u32 4294901760, %v2574_v43  ;;  %v5185_v23 = vsub.f32 %v1675_v27, %v5161_v52 }
 0x174   :  { %2697 = vmatpush.msra.mxu0 %v5736_v29  ;;  %2564 = vmatpush.msrb.mxu1 %v2563_v62  ;;  %v2868_v13 = vsub.f32 %v5127_v54, %v5737_v26  ;;  %v5738_v62 = vand.u32 4294901760, %v4929_v46  ;;  %v2863_v8 = vand.u32 4294901760, %v2862_v17  ;;  %v5739_v43 = vand.u32 4294901760, %v5144_v16 }
 0x175   :  { %2633 = vmatpush.msrb.mxu2 %v5099_v5  ;;  %2674 = vmatpush.msrb.mxu3 %v5060_v12  ;;  %v1581_v21 = vadd.f32 %v1580_v31, %v1508_v50  ;;  %v5571_v27 = vand.u32 4294901760, %v5172_v38  ;;  %v5198_v50 = vsub.f32 %v1673_v55, %v5174_v49  ;;  %v5740_v46 = vand.u32 4294901760, %v4946_v0 }
 0x176   :  { %2701 = vmatpush.msra.mxu0 %v5738_v62  ;;  %v1621_v26 = vpop.f32.mrf.mxu3  ;;  %2570 = vmatpush.msrb.mxu1 %v2569_v44  ;;  %v2874_v29 = vsub.f32 %v5144_v16, %v5739_v43  ;;  %v5205_v17 = vand.u32 4294901760, %v1669_v57  ;;  %v1667_v44 = vld [vmem:[#allocation7 + $0x158] sm:$0xff]  ;;  %v2869_v62 = vand.u32 4294901760, %v2868_v13  ;;  %v2880_v43 = vsub.f32 %v5159_v30, %v2879_v28 }
 0x177   :  { %2805 = vmatpush.msra.mxu2 %v5077_v60  ;;  %2676 = vmatpush.msrb.mxu3 %v5075_v20  ;;  %v5200_v31 = vadd.f32 %v1621_v26, %v1581_v21  ;;  %v5572_v55 = vand.u32 4294901760, %v5185_v23  ;;  %v5212_v21 = vsub.f32 %v1671_v63, %v5187_v18  ;;  %v5741_v0 = vand.u32 4294901760, %v4960_v6  ;;  %v1665_v26 = vld [vmem:[#allocation7 + $0x148] sm:$0xff]  ;;  %v1663_v6 = vld [vmem:[#allocation7 + $0x138] sm:$0xff] }
 0x178   :  { %2705 = vmatpush.msra.mxu0 %v5740_v46  ;;  %2576 = vmatpush.msrb.mxu1 %v2575_v45  ;;  %v2886_v13 = vsub.f32 %v5172_v38, %v5571_v27  ;;  %v2897_v45 = vand.u32 4294901760, %v5198_v50  ;;  %v5222_v46 = vand.u32 4294901760, %v1667_v44  ;;  %v5742_v63 = vand.u32 4294901760, %v4973_v19 }
 0x179   :  { %2807 = vmatpush.msra.mxu2 %v5089_v53  ;;  %2858 = vmatpush.msra.mxu3 %v2857_v11  ;;  %v2875_v11 = vand.u32 4294901760, %v2874_v29  ;;  %v2892_v29 = vsub.f32 %v5185_v23, %v5572_v55  ;;  %v5235_v27 = vand.u32 4294901760, %v1665_v26  ;;  %v5743_v19 = vand.u32 4294901760, %v4986_v2 }
 0x17a   :  { %2709 = vmatpush.msra.mxu0 %v5741_v0  ;;  %2764 = vmatpush.msra.mxu1 %v4892_v33  ;;  %v5228_v33 = vsub.f32 %v1669_v57, %v5205_v17  ;;  %v2903_v0 = vand.u32 4294901760, %v5212_v21  ;;  %v2898_v57 = vsub.f32 %v5198_v50, %v2897_v45  ;;  %v5744_v55 = vand.u32 4294901760, %v5000_v34 }
 0x17b   :  { %2809 = vmatpush.msra.mxu2 %v5104_v7  ;;  %2864 = vmatpush.msra.mxu3 %v2863_v8  ;;  %v2881_v8 = vand.u32 4294901760, %v2880_v43  ;;  %v5247_v43 = vand.u32 4294901760, %v1663_v6  ;;  %v2893_v2 = vand.u32 4294901760, %v2892_v29 }
 0x17c   :  { %2713 = vmatpush.msra.mxu0 %v5742_v63  ;;  %2766 = vmatpush.msra.mxu1 %v4901_v42  ;;  %v2887_v42 = vand.u32 4294901760, %v2886_v13  ;;  %v1661_v63 = vld [vmem:[#allocation7 + $0x128] sm:$0xff]  ;;  %v5745_v13 = vand.u32 4294901760, %v5012_v47 }
 0x17d   :  { %2811 = vmatpush.msra.mxu2 %v5121_v3  ;;  %2870 = vmatpush.msra.mxu3 %v2869_v62  ;;  %v5245_v62 = vsub.f32 %v1667_v44, %v5222_v46  ;;  %v5258_v44 = vsub.f32 %v1665_v26, %v5235_v27  ;;  %v5263_v34 = vand.u32 4294901760, %v1661_v63  ;;  %v5268_v29 = vsub.f32 %v1663_v6, %v5247_v43  ;;  %v1657_v47 = vld [vmem:[#allocation7 + $0x108] sm:$0xff] }
 0x17e   :  { %2717 = vmatpush.msra.mxu0 %v5743_v19  ;;  %2768 = vmatpush.msra.mxu1 %v4907_v24  ;;  %v2909_v24 = vand.u32 4294901760, %v5228_v33  ;;  %v5746_v26 = vand.u32 4294901760, %v5024_v56  ;;  %v5747_v6 = vand.u32 4294901760, %v5036_v39 }
 0x17f   :  { %2813 = vmatpush.msra.mxu2 %v5131_v14  ;;  %2876 = vmatpush.msra.mxu3 %v2875_v11  ;;  %v2904_v11 = vsub.f32 %v5212_v21, %v2903_v0 }
 0x180   :  { %2721 = vmatpush.msra.mxu0 %v5744_v55  ;;  %2770 = vmatpush.msra.mxu1 %v4923_v59  ;;  %v1659_v59 = vld [vmem:[#allocation7 + $0x118] sm:$0xff]  ;;  %v2899_v55 = vand.u32 4294901760, %v2898_v57 }
 0x181   :  { %2815 = vmatpush.msra.mxu2 %v5146_v15  ;;  %2882 = vmatpush.msra.mxu3 %v2881_v8  ;;  %v2915_v8 = vand.u32 4294901760, %v5245_v62  ;;  %v2905_v19 = vand.u32 4294901760, %v2904_v11  ;;  %v5278_v57 = vand.u32 4294901760, %v1659_v59  ;;  %v5291_v11 = vand.u32 4294901760, %v1657_v47 }
 0x182   :  { %2725 = vmatpush.msra.mxu0 %v5745_v13  ;;  %2772 = vmatpush.msra.mxu1 %v4933_v36  ;;  %v2910_v36 = vsub.f32 %v5228_v33, %v2909_v24  ;;  %v5748_v13 = vand.u32 4294901760, %v5043_v1 }
 0x183   :  { %2817 = vmatpush.msra.mxu2 %v5161_v52  ;;  %2888 = vmatpush.msra.mxu3 %v2887_v42  ;;  %v2921_v42 = vand.u32 4294901760, %v5258_v44  ;;  %v2916_v56 = vsub.f32 %v5245_v62, %v2915_v8 }
 0x184   :  { %2729 = vmatpush.msra.mxu0 %v5746_v26  ;;  %2774 = vmatpush.msra.mxu1 %v4943_v22  ;;  %v5284_v22 = vsub.f32 %v1661_v63, %v5263_v34  ;;  %v5301_v63 = vsub.f32 %v1659_v59, %v5278_v57 }
 0x185   :  { %2819 = vmatpush.msra.mxu2 %v5174_v49  ;;  %2894 = vmatpush.msra.mxu3 %v2893_v2  ;;  %v2927_v2 = vand.u32 4294901760, %v5268_v29  ;;  %v2922_v39 = vsub.f32 %v5258_v44, %v2921_v42 }
 0x186   :  { %2733 = vmatpush.msra.mxu0 %v5747_v6  ;;  %2776 = vmatpush.msra.mxu1 %v4957_v4  ;;  %v2911_v4 = vand.u32 4294901760, %v2910_v36  ;;  %v2933_v1 = vand.u32 4294901760, %v5284_v22  ;;  %v5313_v36 = vsub.f32 %v1657_v47, %v5291_v11  ;;  %v5752_v47 = vand.u32 4294901760, %v5099_v5 }
 0x187   :  { %2821 = vmatpush.msra.mxu2 %v5187_v18  ;;  %2900 = vmatpush.msra.mxu3 %v2899_v55  ;;  %v5749_v55 = vand.u32 4294901760, %v5054_v40  ;;  %v2928_v26 = vsub.f32 %v5268_v29, %v2927_v2  ;;  %v2923_v40 = vand.u32 4294901760, %v2922_v39  ;;  %v5758_v39 = vld [vmem:[#allocation17_spill] sm:$0xff] }
 0x188   :  { %2737 = vmatpush.msra.mxu0 %v5748_v13  ;;  %2778 = vmatpush.msra.mxu1 %v4969_v58  ;;  %v2917_v58 = vand.u32 4294901760, %v2916_v56  ;;  %v2934_v59 = vsub.f32 %v5284_v22, %v2933_v1  ;;  %v5755_v56 = vld [vmem:[#allocation13_spill] sm:$0xff]  ;;  %v5756_v13 = vld [vmem:[#allocation24_spill] sm:$0xff] }
 0x189   :  { %2823 = vmatpush.msra.mxu2 %v5205_v17  ;;  %2906 = vmatpush.msra.mxu3 %v2905_v19  ;;  %v5753_v19 = vld [vmem:[#allocation11_spill] sm:$0xff] }
 0x18a   :  { %2636 = vmatmul.f32.vlgmr.msrb.gmra.mxu2 %v3662_v61  ;;  %2741 = vmatpush.msra.mxu0 %v5749_v55  ;;  %v5750_v61 = vand.u32 4294901760, %v5067_v41  ;;  %v5751_v41 = vand.u32 4294901760, %v5087_v9  ;;  %v2935_v6 = vand.u32 4294901760, %v2934_v59  ;;  %v5759_v55 = vld [vmem:[#allocation14_spill] sm:$0xff]  ;;  %v5764_v59 = vld [vmem:[#allocation19_spill] sm:$0xff] }
 0x18b   :  { %2780 = vmatpush.msra.mxu1 %v4982_v51  ;;  %2825 = vmatpush.msra.mxu2 %v5222_v46  ;;  %v2939_v51 = vand.u32 4294901760, %v5301_v63 }
 0x18c   :  { %2912 = vmatpush.msra.mxu3 %v2911_v4  ;;  %2469 = vmatmul.f32.vlgmr.msrb.gmra.mxu0 %v3734_v25  ;;  %v2929_v25 = vand.u32 4294901760, %v2928_v26  ;;  %v5757_v4 = vld [vmem:[#allocation23_spill] sm:$0xff] }
 0x18d   :  { %2680 = vmatmul.f32.vlgmr.msrb.gmra.mxu3 %v3687_v35  ;;  %2745 = vmatpush.msra.mxu0 %v5750_v61  ;;  %v2945_v35 = vand.u32 4294901760, %v5313_v36  ;;  %v5761_v61 = vld [vmem:[#allocation12_spill] sm:$0xff] }
 0x18e   :  { %2782 = vmatpush.msra.mxu1 %v4996_v32  ;;  %2827 = vmatpush.msra.mxu2 %v5235_v27  ;;  %v2940_v32 = vsub.f32 %v5301_v63, %v2939_v51 }
 0x18f   :  { %2918 = vmatpush.msra.mxu3 %v2917_v58  ;;  %2578 = vmatmul.f32.vlgmr.msrb.gmra.mxu1 %v5698_v37  ;;  %v2946_v9 = vsub.f32 %v5313_v36, %v2945_v35 }
 0x190   :  { %2749 = vmatpush.msra.mxu0 %v5751_v41  ;;  %2784 = vmatpush.msra.mxu1 %v5008_v10  ;;  %v5754_v10 = vld [vmem:[#allocation25_spill] sm:$0xff]  ;;  %v2941_v5 = vand.u32 4294901760, %v2940_v32  ;;  %v5767_v32 = vand.u32 4294901760, %v5172_v38 }
 0x191   :  { %2829 = vmatpush.msra.mxu2 %v5247_v43  ;;  %2924 = vmatpush.msra.mxu3 %v2923_v40  ;;  %v2947_v58 = vand.u32 4294901760, %v2946_v9  ;;  %v5760_v26 = vand.u32 4294901760, %v5754_v10  ;;  %v5762_v40 = vand.u32 4294901760, %v5757_v4  ;;  %v5775_v9 = vld [vmem:[#allocation28_spill] sm:$0xff] }
 0x192   :  { %2753 = vmatpush.msra.mxu0 %v5752_v47  ;;  %2786 = vmatpush.msra.mxu1 %v5753_v19 }
 0x193   :  { %2831 = vmatpush.msra.mxu2 %v5263_v34  ;;  %2930 = vmatpush.msra.mxu3 %v2929_v25  ;;  %v5765_v25 = vand.u32 4294901760, %v5144_v16 }
 0x194   :  { %2960 = vmatpush.msrb.mxu0 %v5754_v10  ;;  %2641 = vmatmul.f32.gmra.mxu2 %v5755_v56 }
 0x195   :  { %2788 = vmatpush.msra.mxu1 %v5756_v13  ;;  %2833 = vmatpush.msra.mxu2 %v5278_v57 }
 0x196   :  { %2936 = vmatpush.msra.mxu3 %v2935_v6  ;;  %2963 = vmatpush.msrb.mxu0 %v5757_v4 }
 0x197   :  { %2477 = vmatmul.f32.gmra.mxu0 %v5758_v39  ;;  %2686 = vmatmul.f32.gmra.mxu3 %v5759_v55 }
 0x198   :  { %2790 = vmatpush.msra.mxu1 %v5040_v48  ;;  %2835 = vmatpush.msra.mxu2 %v5291_v11  ;;  %v5763_v48 = vand.u32 4294901760, %v5127_v54 }
 0x199   :  { %2942 = vmatpush.msra.mxu3 %v2941_v5  ;;  %2966 = vmatpush.msrb.mxu0 %v5127_v54 }
 0x19a   :  { %3065 = vmatpush.msrb.mxu2 %v5760_v26  ;;  %2582 = vmatmul.f32.gmra.mxu1 %v5761_v61  ;;  %v5776_v26 = vld [vmem:[#allocation27_spill] sm:$0xff] }
 0x19b   :  { %2792 = vmatpush.msra.mxu1 %v5060_v12  ;;  %2948 = vmatpush.msra.mxu3 %v2947_v58 }
 0x19c   :  { %2969 = vmatpush.msrb.mxu0 %v5144_v16  ;;  %3069 = vmatpush.msrb.mxu2 %v5762_v40 }
 0x19d   :  { %3136 = vmatpush.msrb.mxu3 %v5077_v60  ;;  %2794 = vmatpush.msra.mxu1 %v5075_v20  ;;  %v5766_v20 = vld [vmem:[#allocation15_spill] sm:$0xff] }
 0x19e   :  { %2972 = vmatpush.msrb.mxu0 %v5159_v30  ;;  %3073 = vmatpush.msrb.mxu2 %v5763_v48  ;;  %v5769_v30 = vld [vmem:[#allocation22_spill] sm:$0xff] }
 0x19f   :  { %3018 = vmatpush.msrb.mxu1 %v5077_v60  ;;  %3138 = vmatpush.msrb.mxu3 %v5089_v53  ;;  %v1726_v12 = vpop.f32.mrf.mxu0 }
 0x1a0   :  { %2841 = vmatmul.f32.vlgmr.msra.gmra.mxu2 %v5764_v59  ;;  %2975 = vmatpush.msrb.mxu0 %v5172_v38  ;;  %v5770_v38 = vld [vmem:[#allocation10_spill] sm:$0xff] }
 0x1a1   :  { %3020 = vmatpush.msrb.mxu1 %v5089_v53  ;;  %3077 = vmatpush.msrb.mxu2 %v5765_v25 }
 0x1a2   :  { %3140 = vmatpush.msrb.mxu3 %v5104_v7  ;;  %2755 = vmatmul.f32.vlgmr.msra.gmra.mxu0 %v5698_v37  ;;  %v1835_v60 = vpop.f32.mrf.mxu1 }
 0x1a3   :  { %2950 = vmatmul.f32.vlgmr.msra.gmra.mxu3 %v5766_v20  ;;  %2978 = vmatpush.msrb.mxu0 %v5185_v23  ;;  %v1836_v54 = vadd.f32 %v1835_v60, %v1726_v12  ;;  %v1893_v41 = vpop.f32.mrf.mxu2 }
 0x1a4   :  { %3022 = vmatpush.msrb.mxu1 %v5104_v7  ;;  %3081 = vmatpush.msrb.mxu2 %v2879_v28  ;;  %v5768_v7 = vand.u32 4294901760, %v5185_v23 }
 0x1a5   :  { %3142 = vmatpush.msrb.mxu3 %v5121_v3  ;;  %2796 = vmatmul.f32.vlgmr.msra.gmra.mxu1 %v5698_v37  ;;  %v1894_v53 = vadd.f32 %v1893_v41, %v1836_v54 }
 0x1a6   :  { %2981 = vmatpush.msrb.mxu0 %v5198_v50  ;;  %3024 = vmatpush.msrb.mxu1 %v5121_v3  ;;  %v1937_v16 = vpop.f32.mrf.mxu3 }
 0x1a7   :  { %3085 = vmatpush.msrb.mxu2 %v5767_v32  ;;  %3144 = vmatpush.msrb.mxu3 %v5131_v14  ;;  %v1938_v47 = vadd.f32 %v1937_v16, %v1894_v53 }
 0x1a8   :  { %2984 = vmatpush.msrb.mxu0 %v5212_v21  ;;  %3026 = vmatpush.msrb.mxu1 %v5131_v14 }
 0x1a9   :  { %3089 = vmatpush.msrb.mxu2 %v5768_v7  ;;  %3146 = vmatpush.msrb.mxu3 %v5146_v15  ;;  %v1734_v37 = vpop.f32.mrf.mxu0 }
 0x1aa   :  { %2849 = vmatmul.f32.gmra.mxu2 %v5769_v30  ;;  %2987 = vmatpush.msrb.mxu0 %v5228_v33  ;;  %v5771_v33 = vld [vmem:[#allocation16_spill] sm:$0xff] }
 0x1ab   :  { %3028 = vmatpush.msrb.mxu1 %v5146_v15  ;;  %3093 = vmatpush.msrb.mxu2 %v2897_v45 }
 0x1ac   :  { %3148 = vmatpush.msrb.mxu3 %v5161_v52  ;;  %2759 = vmatmul.f32.gmra.mxu0 %v5761_v61  ;;  %v1839_v3 = vpop.f32.mrf.mxu1 }
 0x1ad   :  { %2954 = vmatmul.f32.gmra.mxu3 %v5770_v38  ;;  %2990 = vmatpush.msrb.mxu0 %v5245_v62  ;;  %v1840_v14 = vadd.f32 %v1839_v3, %v1734_v37  ;;  %v1898_v28 = vpop.f32.mrf.mxu2  ;;  %v5773_v62 = vld [vmem:[#allocation20_spill] sm:$0xff] }
 0x1ae   :  { %3030 = vmatpush.msrb.mxu1 %v5161_v52  ;;  %3097 = vmatpush.msrb.mxu2 %v2903_v0 }
 0x1af   :  { %3150 = vmatpush.msrb.mxu3 %v5174_v49  ;;  %2800 = vmatmul.f32.gmra.mxu1 %v5761_v61  ;;  %v1899_v15 = vadd.f32 %v1898_v28, %v1840_v14 }
 0x1b0   :  { %2993 = vmatpush.msrb.mxu0 %v5258_v44  ;;  %3032 = vmatpush.msrb.mxu1 %v5174_v49  ;;  %v1943_v23 = vpop.f32.mrf.mxu3 }
 0x1b1   :  { %3101 = vmatpush.msrb.mxu2 %v2909_v24  ;;  %3152 = vmatpush.msrb.mxu3 %v5187_v18  ;;  %v1944_v50 = vadd.f32 %v1943_v23, %v1899_v15  ;;  %v5774_v24 = vld [vmem:[#allocation21_spill] sm:$0xff] }
 0x1b2   :  { %2996 = vmatpush.msrb.mxu0 %v5268_v29  ;;  %3034 = vmatpush.msrb.mxu1 %v5187_v18 }
 0x1b3   :  { %3105 = vmatpush.msrb.mxu2 %v2915_v8  ;;  %3154 = vmatpush.msrb.mxu3 %v5205_v17  ;;  %v2012_v52 = vpop.f32.mrf.mxu0 }
 0x1b4   :  { %2999 = vmatpush.msrb.mxu0 %v5284_v22  ;;  %3036 = vmatpush.msrb.mxu1 %v5205_v17  ;;  %v2013_v49 = vadd.f32 %v2012_v52, %v1938_v47 }
 0x1b5   :  { %3109 = vmatpush.msrb.mxu2 %v2921_v42  ;;  %3156 = vmatpush.msrb.mxu3 %v5222_v46 }
 0x1b6   :  { %3002 = vmatpush.msrb.mxu0 %v5301_v63  ;;  %3038 = vmatpush.msrb.mxu1 %v5222_v46  ;;  %v2053_v18 = vpop.f32.mrf.mxu1 }
 0x1b7   :  { %3113 = vmatpush.msrb.mxu2 %v2927_v2  ;;  %3158 = vmatpush.msrb.mxu3 %v5235_v27  ;;  %v2054_v21 = vadd.f32 %v2053_v18, %v2013_v49  ;;  %v2098_v45 = vpop.f32.mrf.mxu2 }
 0x1b8   :  { %3005 = vmatpush.msrb.mxu0 %v5313_v36  ;;  %3040 = vmatpush.msrb.mxu1 %v5235_v27  ;;  %v5772_v27 = vld [vmem:[#allocation18_spill] sm:$0xff] }
 0x1b9   :  { %3117 = vmatpush.msrb.mxu2 %v2933_v1  ;;  %3160 = vmatpush.msrb.mxu3 %v5247_v43  ;;  %v2099_v17 = vadd.f32 %v2098_v45, %v2054_v21 }
 0x1ba   :  { %3008 = vmatmul.f32.vlgmr.msrb.gmra.mxu0 %v5771_v33  ;;  %3042 = vmatpush.msrb.mxu1 %v5247_v43  ;;  %v2207_v46 = vpop.f32.mrf.mxu3 }
 0x1bb   :  { %3121 = vmatpush.msrb.mxu2 %v2939_v51  ;;  %3162 = vmatpush.msrb.mxu3 %v5263_v34  ;;  %v2208_v0 = vadd.f32 %v2207_v46, %v2099_v17 }
 0x1bc   :  { %3044 = vmatpush.msrb.mxu1 %v5263_v34 }
 0x1bd   :  { %3125 = vmatpush.msrb.mxu2 %v2945_v35  ;;  %3164 = vmatpush.msrb.mxu3 %v5278_v57 }
 0x1be   :  { %3127 = vmatmul.f32.vlgmr.msrb.gmra.mxu2 %v5766_v20  ;;  %3046 = vmatpush.msrb.mxu1 %v5278_v57 }
 0x1bf   :  { %3166 = vmatpush.msrb.mxu3 %v5291_v11 }
 0x1c0   :  { %3168 = vmatmul.f32.vlgmr.msrb.gmra.mxu3 %v5766_v20  ;;  %3048 = vmatpush.msrb.mxu1 %v5291_v11 }
 0x1c1   :  { %3052 = vmatmul.f32.vlgmr.msrb.gmra.mxu1 %v5772_v27  ;;  %v2016_v43 = vpop.f32.mrf.mxu0 }
 0x1c2   :  { %3013 = vmatmul.f32.gmra.mxu0 %v5773_v62  ;;  %v2017_v8 = vadd.f32 %v2016_v43, %v1944_v50 }
 0x1c6   :  { %3131 = vmatmul.f32.gmra.mxu2 %v5770_v38 }
 0x1c8   :  { %3172 = vmatmul.f32.gmra.mxu3 %v5770_v38 }
 0x1c9   :  { %3058 = vmatmul.f32.gmra.mxu1 %v5774_v24 }
 0x1ca   :  { %v2057_v44 = vpop.f32.mrf.mxu1 }
 0x1cb   :  { %v2106_v34 = vpop.f32.mrf.mxu2  ;;  %v2058_v42 = vadd.f32 %v2057_v44, %v2017_v8  ;;  %v2265_v57 = vpop.f32.mrf.mxu0 }
 0x1cc   :  { %v2266_v22 = vadd.f32 %v2265_v57, %v2208_v0 }
 0x1cd   :  { %v2107_v2 = vadd.f32 %v2106_v34, %v2058_v42 }
 0x1ce   :  { %v2211_v29 = vpop.f32.mrf.mxu3 }
 0x1cf   :  { %v2212_v35 = vadd.f32 %v2211_v29, %v2107_v2 }
 0x1d5   :  { %v2309_v11 = vpop.f32.mrf.mxu1  ;;  %v2384_v63 = vpop.f32.mrf.mxu2 }
 0x1d6   :  { %v2310_v1 = vadd.f32 %v2309_v11, %v2266_v22 }
 0x1d8   :  { %v2385_v36 = vadd.f32 %v2384_v63, %v2310_v1  ;;  %v2425_v51 = vpop.f32.mrf.mxu3 }
 0x1d9   :  { %v2270_v19 = vpop.f32.mrf.mxu0 }
 0x1da   :  { %v2426_v6 = vadd.f32 %v2425_v51, %v2385_v36  ;;  %v2271_v56 = vadd.f32 %v2270_v19, %v2212_v35  ;;  %v3186_v19 = vld [vmem:[%s5463_s3] sm:$0x3] }
 0x1dc   :  { %v3178_v10 = vadd.f32 %v2426_v6, %v5775_v9  ;;  %v5777_v6 = vld [vmem:[#allocation26_spill] sm:$0xff] }
 0x1de   :  { %v2315_v13 = vpop.f32.mrf.mxu1  ;;  %v3182_v40 = vmul.f32 %v3178_v10, %v3178_v10 }
 0x1df   :  { %v2316_v5 = vadd.f32 %v2315_v13, %v2271_v56  ;;  %v2388_v4 = vpop.f32.mrf.mxu2  ;;  %v3188_v13 = vperm.slane %v3186_v19, 0 }
 0x1e1   :  { %v2389_v39 = vadd.f32 %v2388_v4, %v2316_v5  ;;  %v3189_v5 = vperm.slane %v3186_v19, 1 }
 0x1e2   :  { %v2429_v55 = vpop.f32.mrf.mxu3 }
 0x1e3   :  { %v2430_v58 = vadd.f32 %v2429_v55, %v2389_v39 }
 0x1e5   :  { %v3176_v61 = vsub.f32 %v5776_v26, %v2430_v58 }
 0x1e7   :  { %v3180_v48 = vmul.f32 %v3176_v61, %v3176_v61 }
 0x1e9   :  { %v3184_v12 = vadd.f32 %v3182_v40, %v3180_v48 }
 0x1eb   :  { %v3192_v39 = vmul.f32 %v3188_v13, %v3184_v12 }
 0x209   :  { %v2470_v59 = vpop.f32.mrf.mxu0 }
 0x20c   :  { %v2579_v25 = vpop.f32.mrf.mxu1 }
 0x20d   :  { %v2637_v60 = vpop.f32.mrf.mxu2  ;;  %v2580_v53 = vadd.f32 %v2579_v25, %v2470_v59 }
 0x20f   :  { %v2638_v7 = vadd.f32 %v2637_v60, %v2580_v53 }
 0x210   :  { %v2681_v54 = vpop.f32.mrf.mxu3 }
 0x211   :  { %v2682_v30 = vadd.f32 %v2681_v54, %v2638_v7 }
 0x214   :  { %v2478_v20 = vpop.f32.mrf.mxu0 }
 0x217   :  { %v2583_v41 = vpop.f32.mrf.mxu1  ;;  %v2642_v16 = vpop.f32.mrf.mxu2 }
 0x218   :  { %v2584_v37 = vadd.f32 %v2583_v41, %v2478_v20 }
 0x21a   :  { %v2687_v47 = vpop.f32.mrf.mxu3  ;;  %v2643_v38 = vadd.f32 %v2642_v16, %v2584_v37 }
 0x21c   :  { %v2688_v50 = vadd.f32 %v2687_v47, %v2643_v38 }
 0x21f   :  { %v2756_v32 = vpop.f32.mrf.mxu0 }
 0x220   :  { %v2757_v28 = vadd.f32 %v2756_v32, %v2682_v30 }
 0x222   :  { %v2797_v3 = vpop.f32.mrf.mxu1 }
 0x223   :  { %v2842_v14 = vpop.f32.mrf.mxu2  ;;  %v2798_v52 = vadd.f32 %v2797_v3, %v2757_v28 }
 0x225   :  { %v2843_v21 = vadd.f32 %v2842_v14, %v2798_v52 }
 0x226   :  { %v2951_v23 = vpop.f32.mrf.mxu3 }
 0x227   :  { %v2952_v0 = vadd.f32 %v2951_v23, %v2843_v21 }
 0x229   :  { %v2760_v15 = vpop.f32.mrf.mxu0 }
 0x22a   :  { %v2761_v18 = vadd.f32 %v2760_v15, %v2688_v50 }
 0x22c   :  { %v2801_v49 = vpop.f32.mrf.mxu1 }
 0x22d   :  { %v2850_v17 = vpop.f32.mrf.mxu2  ;;  %v2802_v33 = vadd.f32 %v2801_v49, %v2761_v18 }
 0x22f   :  { %v2851_v43 = vadd.f32 %v2850_v17, %v2802_v33 }
 0x230   :  { %v2955_v46 = vpop.f32.mrf.mxu3 }
 0x231   :  { %v2956_v8 = vadd.f32 %v2955_v46, %v2851_v43 }
 0x237   :  { %v3009_v45 = vpop.f32.mrf.mxu0 }
 0x238   :  { %v3010_v27 = vadd.f32 %v3009_v45, %v2952_v0 }
 0x23e   :  { %v3053_v62 = vpop.f32.mrf.mxu1 }
 0x23f   :  { %v3054_v24 = vadd.f32 %v3053_v62, %v3010_v27  ;;  %v3014_v34 = vpop.f32.mrf.mxu0 }
 0x240   :  { %v3015_v57 = vadd.f32 %v3014_v34, %v2956_v8 }
 0x241   :  { %v3128_v44 = vpop.f32.mrf.mxu2 }
 0x242   :  { %v3129_v42 = vadd.f32 %v3128_v44, %v3054_v24 }
 0x243   :  { %v3169_v29 = vpop.f32.mrf.mxu3 }
 0x244   :  { %v3170_v11 = vadd.f32 %v3169_v29, %v3129_v42 }
 0x246   :  { %v3059_v22 = vpop.f32.mrf.mxu1  ;;  %v3179_v51 = vadd.f32 %v3170_v11, %v5200_v31  ;;  %v3198_v31 = vstv %s5464_s4 }
 0x247   :  { %v3060_v2 = vadd.f32 %v3059_v22, %v3015_v57 }
 0x248   :  { %v3183_v10 = vmul.f32 %v3179_v51, %v3179_v51 }
 0x249   :  { %v3132_v63 = vpop.f32.mrf.mxu2 }
 0x24a   :  { %v3133_v1 = vadd.f32 %v3132_v63, %v3060_v2 }
 0x24b   :  { %v3173_v36 = vpop.f32.mrf.mxu3 }
 0x24c   :  { %v3174_v35 = vadd.f32 %v3173_v36, %v3133_v1 }
 0x24e   :  { %v3177_v9 = vsub.f32 %v5777_v6, %v3174_v35 }
 0x250   :  { %v3181_v56 = vmul.f32 %v3177_v9, %v3177_v9 }
 0x252   :  { %v3185_v4 = vadd.f32 %v3183_v10, %v3181_v56 }
 0x254   :  { %v3193_v55 = vmul.f32 %v3189_v5, %v3185_v4 }
 0x256   :  { %v3194_v58 = vadd.f32 %v3193_v55, %v3192_v39 }
 0x258   :  { %3195 = vadd.xlane.f32.xlu0 %v3194_v58 }
 0x2cb   :  { %v3196_v26 = vpop.xlane.xlu0 %3195 }
 0x2cc   :  { %v3199_v61 = vadd.f32 %v3198_v31, %v3196_v26 }
 0x2ce   :  { %v3227_v40 = vmul.f32 -1.442695, %v3199_v61 }
 0x2d0   :  { %3233 = vpow2.f32 %v3227_v40 }
 0x2d6   :  { %v3234_v48 = vpop.eup %3233 }
 0x2d7   :  { %v3203_v59 = vadd.f32 1.0, %v3234_v48 }
 0x2d9   :  { %3235 = vrcp.f32 %v3203_v59  ;;  %v3215_v54 = vand.u32 2147483648, %v3203_v59  ;;  %v3213_v12 = vand.u32 2147483647, %v3203_v59  ;;  %vm3209_vm1 = vweird.f32 %v3203_v59 }
 0x2db   :  { %v3216_v16 = vor.u32 1.1754944e-38, %v3215_v54  ;;  %vm3214_vm4 = vcmp.eq.f32.partialorder %v3213_v12, 8.507059e+37 }
 0x2df   :  { %v3236_v25 = vpop.eup %3235 }
 0x2e0   :  { %v3205_v60 = vmul.f32 %v3236_v25, %v3203_v59  ;;  %vm3210_vm0 = vweird.f32 %v3236_v25 }
 0x2e1   :  { %vm3211_vm2 = vmor %vm3209_vm1, %vm3210_vm0 }
 0x2e2   :  { %v3206_v20 = vsub.f32 1.0, %v3205_v60 }
 0x2e4   :  { %v3207_v41 = vmul.f32 %v3236_v25, %v3206_v20 }
 0x2e6   :  { %v3208_v53 = vadd.f32 %v3236_v25, %v3207_v41 }
 0x2e8   :  { %v3212_v32 = vsel %vm3211_vm2, %v3236_v25, %v3208_v53 }
 0x2e9   :  { %v3217_v47 = vsel %vm3214_vm4, %v3216_v16, %v3212_v32 }
 0x2ea   :  { %3220 = vst.msk [vmem:[%s5465_s5] sm:$0xff] %vm3219_vm3, %v3217_v47 }
 0x2eb   :  { %3225 = vsyncpa [#allocation4], 1 }
 0x2ec   :  { %3226 = vsyncpa [#allocation6], 1 }

</bundles_post_ra>
